<compile_context>
chip_gen: v7x
topology: tpu7x:2x2x1
jax: 0.10.0
libtpu: 0.0.40
codegen_flags: <defaults>
</compile_context>

<pallas_src>
import functools

import jax
import jax.numpy as jnp
from jax import lax
from jax.experimental import pallas as pl
from jax.experimental.pallas import tpu as pltpu

# ----------------------------- hyper-params ---------------------------------
PATCH = 14
IN_CHANS = 3
EMBED_DIM = 32          # synthetic stand-in for DINOV2_ARCHS['s'] = 384
NUM_HEADS = 2
DEPTH = 2
MLP_HIDDEN = 4 * EMBED_DIM
FEAT_DIM = 16           # feat_dim of the top Linear layer
FEAT_PAD = ((FEAT_DIM + 127) // 128) * 128   # lane-dense output slab (128)

IMG = 32                                     # input spatial size
RESIZED = int(round(IMG / 14)) * 14          # resize_multiple_14 -> 28
N_PATCH_SIDE = RESIZED // PATCH
N_PATCHES = N_PATCH_SIDE * N_PATCH_SIDE
NUM_TOKENS = N_PATCHES + 1                   # +1 CLS token
LN_EPS = 1e-6                                # DINOv2 LayerNorm eps

# MXU operand dtype (weights + activations at the dots); accumulation & all
# elementwise epilogues remain f32 (v5e's VPU/EUP have no bf16).
MM_DTYPE = jnp.bfloat16


def _ln(x, g, b):
    mu = jnp.mean(x, axis=-1, keepdims=True)
    xc = x - mu
    var = jnp.mean(xc * xc, axis=-1, keepdims=True)
    return xc * lax.rsqrt(var + LN_EPS) * g + b


# ------------------------------ fused kernel --------------------------------
def _dino_fused_kernel(
    patches_ref, patch_w_ref, patch_b_ref, cls_ref, pos_ref,
    ln1_g_ref, ln1_b_ref, qkv_w_ref, qkv_b_ref,
    proj_w_ref, proj_b_ref, ls1_ref,
    ln2_g_ref, ln2_b_ref, fc1_w_ref, fc1_b_ref, fc2_w_ref, fc2_b_ref, ls2_ref,
    norm_g_ref, norm_b_ref, fc_w_ref, fc_b_ref,
    out_ref,
    *, n_patches, depth, num_heads, b_blk):
    """Whole DINOv2-style ViT forward for B_BLK images per grid step.

    All B_BLK images' tokens are stacked into one [B_BLK*T, D] activation held
    in vregs; every matmul is batched across images (attention runs per image /
    per head on statically lane-sliced sub-blocks of the fused QKV result).
    No intermediate HBM traffic, no extra kernel launches, no VMEM scratch.
    """
    D = pos_ref.shape[-1]
    dh = D // num_heads
    T = n_patches + 1

    # 1) patch embedding: Conv2d(k=14,s=14) lowered to ONE wide MXU matmul over
    #    all B_BLK images' patch rows (K already zero-padded to a 128 multiple).
    p = jnp.concatenate([patches_ref[b] for b in range(b_blk)], axis=0)       # [B_BLK*N, Kpad] bf16
    tok = jnp.dot(p, patch_w_ref[...],
                  preferred_element_type=jnp.float32) + patch_b_ref[...]      # [B_BLK*N, D] f32

    # 2) prepend CLS token + positional embedding, assembled directly in vregs
    cls_row = cls_ref[...] + pos_ref[0:1, :]
    pos_pat = pos_ref[1:T, :]
    rows = []
    for b in range(b_blk):
        rows.append(cls_row)
        rows.append(tok[b * n_patches:(b + 1) * n_patches, :] + pos_pat)
    xf = jnp.concatenate(rows, axis=0)                                         # [B_BLK*T, D] f32

    # 3) transformer blocks, statically unrolled (depth=2 here).
    # TODO(synk): at real DINOv2-S scale (depth=12, D=384) switch to a
    # lax.fori_loop over the leading depth axis and stream per-block weights
    # (fp32/bf16 replicated weights would not fit v7x's 64 MiB VMEM).
    for d in range(depth):
        # --- attention (pre-norm): ONE fused [Tt,D]@[D,3D] QKV matmul ---
        h1 = _ln(xf, ln1_g_ref[d], ln1_b_ref[d])
        qkv = jnp.dot(h1.astype(MM_DTYPE), qkv_w_ref[d],
                      preferred_element_type=jnp.float32) + qkv_b_ref[d]       # [Tt, 3D]
        attn_rows = []
        for b in range(b_blk):
            q_b = qkv[b * T:(b + 1) * T, 0:D]          # attention scale already folded into q
            k_b = qkv[b * T:(b + 1) * T, D:2 * D]
            v_b = qkv[b * T:(b + 1) * T, 2 * D:3 * D].astype(MM_DTYPE)
            heads = []
            for h in range(num_heads):
                sl = slice(h * dh, (h + 1) * dh)
                s = lax.dot_general(q_b[:, sl].astype(MM_DTYPE),
                                    k_b[:, sl].astype(MM_DTYPE),
                                    (((1,), (1,)), ((), ())),
                                    preferred_element_type=jnp.float32)        # [T, T]
                s = s - jnp.max(s, axis=-1, keepdims=True)
                pr = jnp.exp(s)
                pr = pr * pl.reciprocal(jnp.sum(pr, axis=-1, keepdims=True), approx=True)
                heads.append(jnp.dot(pr.astype(MM_DTYPE), v_b[:, sl],
                                     preferred_element_type=jnp.float32))      # [T, dh]
            attn_rows.append(jnp.concatenate(heads, axis=-1))                  # [T, D]
        attn = jnp.concatenate(attn_rows, axis=0)                              # [Tt, D]
        # single concatenated out-projection, fused LayerScale + residual epilogue
        o = jnp.dot(attn.astype(MM_DTYPE), proj_w_ref[d],
                    preferred_element_type=jnp.float32) + proj_b_ref[d]
        xf = xf + ls1_ref[d] * o

        # --- MLP (pre-norm) ---
        h2 = _ln(xf, ln2_g_ref[d], ln2_b_ref[d])
        h2 = jnp.dot(h2.astype(MM_DTYPE), fc1_w_ref[d],
                     preferred_element_type=jnp.float32) + fc1_b_ref[d]
        # TODO(synk): PyTorch nn.GELU default is exact erf; tanh approximation used here.
        h2 = jax.nn.gelu(h2, approximate=True)
        h2 = jnp.dot(h2.astype(MM_DTYPE), fc2_w_ref[d],
                     preferred_element_type=jnp.float32) + fc2_b_ref[d]
        xf = xf + ls2_ref[d] * h2

    # 4) final norm, CLS readout for all B_BLK images at once, fc head, L2 norm
    #    -> one lane-dense (B_BLK, 128) output store.
    xn = _ln(xf, norm_g_ref[...], norm_b_ref[...])
    cls_rows = jnp.concatenate([xn[b * T:b * T + 1, :] for b in range(b_blk)], axis=0)
    feat = jnp.dot(cls_rows.astype(MM_DTYPE), fc_w_ref[...],
                   preferred_element_type=jnp.float32) + fc_b_ref[...]         # [B_BLK, FEAT_PAD]
    nrm = jnp.sqrt(jnp.sum(feat * feat, axis=-1, keepdims=True))
    out_ref[0] = (feat / jnp.maximum(nrm, 1e-12)).astype(out_ref.dtype)


def _rep_spec(shape):
    """Full-array BlockSpec replicated across the batch grid."""
    zero = (0,) * len(shape)
    return pl.BlockSpec(shape, lambda s, _z=zero: _z)


# ------------------------------- glue (JAX) ---------------------------------
def resize_multiple_14(images):
    b, c, h, w = images.shape
    h2 = int(round(h / 14)) * 14
    w2 = int(round(w / 14)) * 14
    # TODO(synk): antialiased bilinear resize kept host-side (no clean Pallas equivalent);
    # not bit-identical to torchvision's antialiased resize.
    return jax.image.resize(images, (b, c, h2, w2), method="linear", antialias=True)


def patchify(images, p):
    """NCHW -> [B, N, C*p*p] patch rows, (c, ph, pw) ordering (== Conv2d flatten)."""
    b, c, h, w = images.shape
    nh, nw = h // p, w // p
    x = images.reshape(b, c, nh, p, nw, p)
    x = x.transpose(0, 2, 4, 1, 3, 5)            # B, nh, nw, C, p, p
    return x.reshape(b, nh * nw, c * p * p), nh * nw


def init_params(key):
    def w(k, shape, s=0.02):
        return (s * jax.random.normal(k, shape)).astype(jnp.float32)

    ks = jax.random.split(key, 8 + DEPTH)
    params = dict(
        patch_w=w(ks[0], (IN_CHANS * PATCH * PATCH, EMBED_DIM)),
        patch_b=jnp.zeros((EMBED_DIM,), jnp.float32),
        cls_token=w(ks[1], (1, 1, EMBED_DIM)),
        pos_embed=w(ks[2], (1, NUM_TOKENS, EMBED_DIM)),
        norm_g=jnp.ones((EMBED_DIM,), jnp.float32),
        norm_b=jnp.zeros((EMBED_DIM,), jnp.float32),
        fc_w=w(ks[3], (EMBED_DIM, FEAT_DIM)),
        fc_b=jnp.zeros((FEAT_DIM,), jnp.float32),
        blocks=[],
    )
    for d in range(DEPTH):
        bk = jax.random.split(ks[8 + d], 4)
        params["blocks"].append(dict(
            ln1_g=jnp.ones((EMBED_DIM,), jnp.float32),
            ln1_b=jnp.zeros((EMBED_DIM,), jnp.float32),
            qkv_w=w(bk[0], (EMBED_DIM, 3 * EMBED_DIM)),
            qkv_b=jnp.zeros((3 * EMBED_DIM,), jnp.float32),
            proj_w=w(bk[1], (EMBED_DIM, EMBED_DIM)),
            proj_b=jnp.zeros((EMBED_DIM,), jnp.float32),
            ls1=jnp.full((EMBED_DIM,), 1e-5, jnp.float32),
            ln2_g=jnp.ones((EMBED_DIM,), jnp.float32),
            ln2_b=jnp.zeros((EMBED_DIM,), jnp.float32),
            fc1_w=w(bk[2], (EMBED_DIM, MLP_HIDDEN)),
            fc1_b=jnp.zeros((MLP_HIDDEN,), jnp.float32),
            fc2_w=w(bk[3], (MLP_HIDDEN, EMBED_DIM)),
            fc2_b=jnp.zeros((EMBED_DIM,), jnp.float32),
            ls2=jnp.full((EMBED_DIM,), 1e-5, jnp.float32),
        ))
    return params


def prepare_inputs(params, images):
    """Shared host-side prep for kernel & reference: resize + im2col, 128-align
    the patch K dim, fold the attention scale into q, pad the fc head to a
    lane-dense 128-wide slab, stack per-block params on a leading depth axis,
    and cast MXU operands (weights + patches) to bf16."""
    images = resize_multiple_14(images)
    patches, n_patches = patchify(images, PATCH)            # [B, N, C*14*14] f32
    K = patches.shape[-1]
    k_pad = ((K + 127) // 128) * 128                        # 588 -> 640
    patches = jnp.pad(patches, ((0, 0), (0, 0), (0, k_pad - K))).astype(MM_DTYPE)

    D, H = EMBED_DIM, NUM_HEADS
    dh = D // H
    scale = dh ** -0.5
    blocks = params["blocks"]
    depth = len(blocks)

    def stk(name, tail):
        return jnp.stack([blk[name] for blk in blocks]).reshape((depth,) + tail)

    qkv_w = jnp.stack([blk["qkv_w"] for blk in blocks])     # [depth, D, 3D]
    qkv_b = jnp.stack([blk["qkv_b"] for blk in blocks]).reshape(depth, 1, 3 * D)
    scale_row = jnp.concatenate([jnp.full((D,), scale, jnp.float32),
                                 jnp.ones((2 * D,), jnp.float32)])
    qkv_w = (qkv_w * scale_row).astype(MM_DTYPE)            # fold scale into q columns
    qkv_b = qkv_b * scale_row

    arrs = dict(
        patch_w=jnp.pad(params["patch_w"], ((0, k_pad - K), (0, 0))).astype(MM_DTYPE),
        patch_b=params["patch_b"].reshape(1, D),
        cls=params["cls_token"].reshape(1, D),
        pos=params["pos_embed"].reshape(-1, D),
        ln1_g=stk("ln1_g", (1, D)), ln1_b=stk("ln1_b", (1, D)),
        qkv_w=qkv_w, qkv_b=qkv_b,
        proj_w=stk("proj_w", (D, D)).astype(MM_DTYPE),
        proj_b=stk("proj_b", (1, D)),
        ls1=stk("ls1", (1, D)),
        ln2_g=stk("ln2_g", (1, D)), ln2_b=stk("ln2_b", (1, D)),
        fc1_w=stk("fc1_w", (D, MLP_HIDDEN)).astype(MM_DTYPE),
        fc1_b=stk("fc1_b", (1, MLP_HIDDEN)),
        fc2_w=stk("fc2_w", (MLP_HIDDEN, D)).astype(MM_DTYPE),
        fc2_b=stk("fc2_b", (1, D)),
        ls2=stk("ls2", (1, D)),
        norm_g=params["norm_g"].reshape(1, D),
        norm_b=params["norm_b"].reshape(1, D),
        fc_w=jnp.pad(params["fc_w"], ((0, 0), (0, FEAT_PAD - FEAT_DIM))).astype(MM_DTYPE),
        fc_b=jnp.pad(params["fc_b"], (0, FEAT_PAD - FEAT_DIM)).reshape(1, FEAT_PAD),
    )
    assert arrs["pos"].shape[0] == n_patches + 1
    return patches, arrs, n_patches, depth


_PARAM_ORDER = ("patch_w", "patch_b", "cls", "pos",
                "ln1_g", "ln1_b", "qkv_w", "qkv_b",
                "proj_w", "proj_b", "ls1",
                "ln2_g", "ln2_b", "fc1_w", "fc1_b", "fc2_w", "fc2_b", "ls2",
                "norm_g", "norm_b", "fc_w", "fc_b")


def dino_wrapper_forward(params, images):
    patches, arrs, n_patches, depth = prepare_inputs(params, images)
    B, N, k_pad = patches.shape

    # batch blocking: several images per grid step (fills MXU sublanes, amortizes
    # per-step pipeline overhead); keep >=2 grid steps so v7x's two TCs both work.
    b_blk = min(8, max(1, -(-B // 2)))
    num_steps = -(-B // b_blk)
    b_pad = num_steps * b_blk
    if b_pad != B:
        patches = jnp.pad(patches, ((0, b_pad - B), (0, 0), (0, 0)))

    param_arrays = [arrs[k] for k in _PARAM_ORDER]
    in_specs = [pl.BlockSpec((b_blk, N, k_pad), lambda s: (s, 0, 0))]
    in_specs += [_rep_spec(a.shape) for a in param_arrays]

    kernel = functools.partial(_dino_fused_kernel, n_patches=n_patches,
                               depth=depth, num_heads=NUM_HEADS, b_blk=b_blk)

    feat = pl.pallas_call(
        kernel,
        out_shape=jax.ShapeDtypeStruct((num_steps, b_blk, FEAT_PAD), jnp.float32),
        grid=(num_steps,),
        in_specs=in_specs,
        out_specs=pl.BlockSpec((1, b_blk, FEAT_PAD), lambda s: (s, 0, 0)),
        compiler_params=pltpu.CompilerParams(
            dimension_semantics=("parallel",)),              # image blocks split over TCs
    )(patches, *param_arrays)
    return feat.reshape(b_pad, FEAT_PAD)[:B, :FEAT_DIM]


# --------------------------- pure-JAX reference ------------------------------
def dino_forward_ref(params, images):
    """Same math (same bf16 cast points, f32 accumulation/epilogues) in plain JAX."""
    patches, arrs, n_patches, depth = prepare_inputs(params, images)
    B, N, k_pad = patches.shape
    D, H = EMBED_DIM, NUM_HEADS
    dh = D // H
    T = n_patches + 1

    tok = (jnp.dot(patches.reshape(B * N, k_pad), arrs["patch_w"],
                   preferred_element_type=jnp.float32).reshape(B, N, D)
           + arrs["patch_b"])
    cls = jnp.broadcast_to(arrs["cls"], (B, 1, D))
    x = jnp.concatenate([cls, tok], axis=1) + arrs["pos"]
    for d in range(depth):
        h1 = _ln(x, arrs["ln1_g"][d], arrs["ln1_b"][d])
        qkv = jnp.einsum("btd,de->bte", h1.astype(MM_DTYPE), arrs["qkv_w"][d],
                         preferred_element_type=jnp.float32) + arrs["qkv_b"][d]
        q, k, v = qkv[..., 0:D], qkv[..., D:2 * D], qkv[..., 2 * D:3 * D]
        q = q.reshape(B, T, H, dh).transpose(0, 2, 1, 3)
        k = k.reshape(B, T, H, dh).transpose(0, 2, 1, 3)
        v = v.reshape(B, T, H, dh).transpose(0, 2, 1, 3)
        s = jnp.einsum("bhqd,bhkd->bhqk", q.astype(MM_DTYPE), k.astype(MM_DTYPE),
                       preferred_element_type=jnp.float32)
        s = s - jnp.max(s, axis=-1, keepdims=True)
        p = jnp.exp(s)
        p = p / jnp.sum(p, axis=-1, keepdims=True)
        o = jnp.einsum("bhqk,bhkd->bhqd", p.astype(MM_DTYPE), v.astype(MM_DTYPE),
                       preferred_element_type=jnp.float32)
        o = o.transpose(0, 2, 1, 3).reshape(B, T, D)
        o = jnp.einsum("btd,de->bte", o.astype(MM_DTYPE), arrs["proj_w"][d],
                       preferred_element_type=jnp.float32) + arrs["proj_b"][d]
        x = x + arrs["ls1"][d] * o
        h2 = _ln(x, arrs["ln2_g"][d], arrs["ln2_b"][d])
        h2 = jnp.einsum("btd,dm->btm", h2.astype(MM_DTYPE), arrs["fc1_w"][d],
                        preferred_element_type=jnp.float32) + arrs["fc1_b"][d]
        h2 = jax.nn.gelu(h2, approximate=True)
        h2 = jnp.einsum("btm,md->btd", h2.astype(MM_DTYPE), arrs["fc2_w"][d],
                        preferred_element_type=jnp.float32) + arrs["fc2_b"][d]
        x = x + arrs["ls2"][d] * h2
    xn = _ln(x, arrs["norm_g"], arrs["norm_b"])
    feat = jnp.dot(xn[:, 0, :].astype(MM_DTYPE), arrs["fc_w"],
                   preferred_element_type=jnp.float32) + arrs["fc_b"]
    feat = feat[:, :FEAT_DIM]
    nrm = jnp.sqrt(jnp.sum(feat * feat, axis=-1, keepdims=True))
    return feat / jnp.maximum(nrm, 1e-12)


if __name__ == "__main__":
    key = jax.random.PRNGKey(0)
    k_img, k_par = jax.random.split(key)
    B_TEST = 4                                                  # exercises B_BLK=2, grid=(2,)
    images = jax.random.normal(k_img, (B_TEST, IN_CHANS, IMG, IMG), jnp.float32)  # NCHW
    params = init_params(k_par)

    fwd = jax.jit(dino_wrapper_forward)
    out = jax.block_until_ready(fwd(params, images))

    assert out.shape == (B_TEST, FEAT_DIM)
    # rows are unit-norm after L2Norm
    assert bool(jnp.all(jnp.abs(jnp.sum(out * out, axis=1) - 1.0) < 1e-3))
    # numerical check against a pure-JAX reference of the same forward pass
    ref = jax.block_until_ready(jax.jit(dino_forward_ref)(params, images))
    assert bool(jnp.allclose(out, ref, atol=5e-3, rtol=5e-3)), \
        float(jnp.max(jnp.abs(out - ref)))
    print("KERNEL_OK")
</pallas_src>

<mosaic_0001>
module attributes {stable_mosaic.version = 11 : i64} {
  func.func @_dino_fused_kernel(%arg0: i32, %arg1: memref<2x4x640xbf16, #tpu.memory_space<vmem>>, %arg2: memref<640x32xbf16, #tpu.memory_space<vmem>>, %arg3: memref<1x32xf32, #tpu.memory_space<vmem>>, %arg4: memref<1x32xf32, #tpu.memory_space<vmem>>, %arg5: memref<5x32xf32, #tpu.memory_space<vmem>>, %arg6: memref<2x1x32xf32, #tpu.memory_space<vmem>>, %arg7: memref<2x1x32xf32, #tpu.memory_space<vmem>>, %arg8: memref<2x32x96xbf16, #tpu.memory_space<vmem>>, %arg9: memref<2x1x96xf32, #tpu.memory_space<vmem>>, %arg10: memref<2x32x32xbf16, #tpu.memory_space<vmem>>, %arg11: memref<2x1x32xf32, #tpu.memory_space<vmem>>, %arg12: memref<2x1x32xf32, #tpu.memory_space<vmem>>, %arg13: memref<2x1x32xf32, #tpu.memory_space<vmem>>, %arg14: memref<2x1x32xf32, #tpu.memory_space<vmem>>, %arg15: memref<2x32x128xbf16, #tpu.memory_space<vmem>>, %arg16: memref<2x1x128xf32, #tpu.memory_space<vmem>>, %arg17: memref<2x128x32xbf16, #tpu.memory_space<vmem>>, %arg18: memref<2x1x32xf32, #tpu.memory_space<vmem>>, %arg19: memref<2x1x32xf32, #tpu.memory_space<vmem>>, %arg20: memref<1x32xf32, #tpu.memory_space<vmem>>, %arg21: memref<1x32xf32, #tpu.memory_space<vmem>>, %arg22: memref<32x128xbf16, #tpu.memory_space<vmem>>, %arg23: memref<1x128xf32, #tpu.memory_space<vmem>>, %arg24: memref<1x2x128xf32, #tpu.memory_space<vmem>>) attributes {dimension_semantics = [#tpu.dimension_semantics<parallel>], iteration_bounds = array<i64: 2>, scalar_prefetch = 0 : i64, scratch_operands = 0 : i64, tpu.core_type = #tpu.core_type<tc>, window_params = [{transform_indices = @transform_0, window_bounds = array<i64: 2, 4, 640>}, {pipeline_mode = #tpu.pipeline_mode<synchronous>, transform_indices = @transform_1, window_bounds = array<i64: 640, 32>}, {pipeline_mode = #tpu.pipeline_mode<synchronous>, transform_indices = @transform_2, window_bounds = array<i64: 1, 32>}, {pipeline_mode = #tpu.pipeline_mode<synchronous>, transform_indices = @transform_3, window_bounds = array<i64: 1, 32>}, {pipeline_mode = #tpu.pipeline_mode<synchronous>, transform_indices = @transform_4, window_bounds = array<i64: 5, 32>}, {pipeline_mode = #tpu.pipeline_mode<synchronous>, transform_indices = @transform_5, window_bounds = array<i64: 2, 1, 32>}, {pipeline_mode = #tpu.pipeline_mode<synchronous>, transform_indices = @transform_6, window_bounds = array<i64: 2, 1, 32>}, {pipeline_mode = #tpu.pipeline_mode<synchronous>, transform_indices = @transform_7, window_bounds = array<i64: 2, 32, 96>}, {pipeline_mode = #tpu.pipeline_mode<synchronous>, transform_indices = @transform_8, window_bounds = array<i64: 2, 1, 96>}, {pipeline_mode = #tpu.pipeline_mode<synchronous>, transform_indices = @transform_9, window_bounds = array<i64: 2, 32, 32>}, {pipeline_mode = #tpu.pipeline_mode<synchronous>, transform_indices = @transform_10, window_bounds = array<i64: 2, 1, 32>}, {pipeline_mode = #tpu.pipeline_mode<synchronous>, transform_indices = @transform_11, window_bounds = array<i64: 2, 1, 32>}, {pipeline_mode = #tpu.pipeline_mode<synchronous>, transform_indices = @transform_12, window_bounds = array<i64: 2, 1, 32>}, {pipeline_mode = #tpu.pipeline_mode<synchronous>, transform_indices = @transform_13, window_bounds = array<i64: 2, 1, 32>}, {pipeline_mode = #tpu.pipeline_mode<synchronous>, transform_indices = @transform_14, window_bounds = array<i64: 2, 32, 128>}, {pipeline_mode = #tpu.pipeline_mode<synchronous>, transform_indices = @transform_15, window_bounds = array<i64: 2, 1, 128>}, {pipeline_mode = #tpu.pipeline_mode<synchronous>, transform_indices = @transform_16, window_bounds = array<i64: 2, 128, 32>}, {pipeline_mode = #tpu.pipeline_mode<synchronous>, transform_indices = @transform_17, window_bounds = array<i64: 2, 1, 32>}, {pipeline_mode = #tpu.pipeline_mode<synchronous>, transform_indices = @transform_18, window_bounds = array<i64: 2, 1, 32>}, {pipeline_mode = #tpu.pipeline_mode<synchronous>, transform_indices = @transform_19, window_bounds = array<i64: 1, 32>}, {pipeline_mode = #tpu.pipeline_mode<synchronous>, transform_indices = @transform_20, window_bounds = array<i64: 1, 32>}, {pipeline_mode = #tpu.pipeline_mode<synchronous>, transform_indices = @transform_21, window_bounds = array<i64: 32, 128>}, {pipeline_mode = #tpu.pipeline_mode<synchronous>, transform_indices = @transform_22, window_bounds = array<i64: 1, 128>}, {transform_indices = @transform_23, window_bounds = array<i64: 1, 2, 128>}]} {
    %c0 = arith.constant 0 : index
    %c0_0 = arith.constant 0 : index
    %c0_1 = arith.constant 0 : index
    %0 = vector.load %arg1[%c0, %c0_0, %c0_1] : memref<2x4x640xbf16, #tpu.memory_space<vmem>>, vector<1x4x640xbf16>
    %1 = vector.shape_cast %0 : vector<1x4x640xbf16> to vector<4x640xbf16>
    %c1 = arith.constant 1 : index
    %c0_2 = arith.constant 0 : index
    %c0_3 = arith.constant 0 : index
    %2 = vector.load %arg1[%c1, %c0_2, %c0_3] : memref<2x4x640xbf16, #tpu.memory_space<vmem>>, vector<1x4x640xbf16>
    %3 = vector.shape_cast %2 : vector<1x4x640xbf16> to vector<4x640xbf16>
    %4 = tpu.concatenate %1, %3 in 0 : vector<4x640xbf16>, vector<4x640xbf16> -> vector<8x640xbf16>
    %c0_4 = arith.constant 0 : index
    %c0_5 = arith.constant 0 : index
    %5 = vector.load %arg2[%c0_4, %c0_5] : memref<640x32xbf16, #tpu.memory_space<vmem>>, vector<640x32xbf16>
    %cst = arith.constant dense<0.000000e+00> : vector<8x32xf32>
    %6 = tpu.matmul %4, %5, %cst {dimension_numbers = #tpu.dot_dimension_numbers<[1], [0], [0], [1], [0, 0, 1, 1], [], []>} : vector<8x640xbf16>, vector<640x32xbf16>, vector<8x32xf32> -> vector<8x32xf32>
    %c0_6 = arith.constant 0 : index
    %c0_7 = arith.constant 0 : index
    %7 = vector.load %arg3[%c0_6, %c0_7] : memref<1x32xf32, #tpu.memory_space<vmem>>, vector<1x32xf32>
    %8 = vector.broadcast %7 : vector<1x32xf32> to vector<8x32xf32>
    %9 = arith.addf %6, %8 : vector<8x32xf32>
    %c0_8 = arith.constant 0 : index
    %c0_9 = arith.constant 0 : index
    %10 = vector.load %arg4[%c0_8, %c0_9] : memref<1x32xf32, #tpu.memory_space<vmem>>, vector<1x32xf32>
    %c0_10 = arith.constant 0 : index
    %c0_11 = arith.constant 0 : index
    %11 = vector.load %arg5[%c0_10, %c0_11] : memref<5x32xf32, #tpu.memory_space<vmem>>, vector<1x32xf32>
    %12 = arith.addf %10, %11 : vector<1x32xf32>
    %c1_12 = arith.constant 1 : index
    %c0_13 = arith.constant 0 : index
    %13 = vector.load %arg5[%c1_12, %c0_13] : memref<5x32xf32, #tpu.memory_space<vmem>>, vector<4x32xf32>
    %14 = vector.extract_strided_slice %9 {offsets = [0, 0], sizes = [4, 32], strides = [1, 1]} : vector<8x32xf32> to vector<4x32xf32>
    %15 = arith.addf %14, %13 : vector<4x32xf32>
    %16 = vector.extract_strided_slice %9 {offsets = [4, 0], sizes = [4, 32], strides = [1, 1]} : vector<8x32xf32> to vector<4x32xf32>
    %17 = arith.addf %16, %13 : vector<4x32xf32>
    %18 = tpu.concatenate %12, %15, %12, %17 in 0 : vector<1x32xf32>, vector<4x32xf32>, vector<1x32xf32>, vector<4x32xf32> -> vector<10x32xf32>
    %c0_14 = arith.constant 0 : index
    %c0_15 = arith.constant 0 : index
    %c0_16 = arith.constant 0 : index
    %19 = vector.load %arg6[%c0_14, %c0_15, %c0_16] : memref<2x1x32xf32, #tpu.memory_space<vmem>>, vector<1x1x32xf32>
    %20 = vector.shape_cast %19 : vector<1x1x32xf32> to vector<1x32xf32>
    %c0_17 = arith.constant 0 : index
    %c0_18 = arith.constant 0 : index
    %c0_19 = arith.constant 0 : index
    %21 = vector.load %arg7[%c0_17, %c0_18, %c0_19] : memref<2x1x32xf32, #tpu.memory_space<vmem>>, vector<1x1x32xf32>
    %22 = vector.shape_cast %21 : vector<1x1x32xf32> to vector<1x32xf32>
    %cst_20 = arith.constant dense<0.000000e+00> : vector<10xf32>
    %23 = vector.multi_reduction <add>, %18, %cst_20 [1] : vector<10x32xf32> to vector<10xf32>
    %24 = vector.shape_cast %23 : vector<10xf32> to vector<10x1xf32>
    %cst_21 = arith.constant 3.200000e+01 : f32
    %25 = vector.broadcast %cst_21 : f32 to vector<10x1xf32>
    %26 = arith.divf %24, %25 : vector<10x1xf32>
    %27 = vector.broadcast %26 : vector<10x1xf32> to vector<10x32xf32>
    %28 = arith.subf %18, %27 : vector<10x32xf32>
    %29 = arith.mulf %28, %28 : vector<10x32xf32>
    %cst_22 = arith.constant dense<0.000000e+00> : vector<10xf32>
    %30 = vector.multi_reduction <add>, %29, %cst_22 [1] : vector<10x32xf32> to vector<10xf32>
    %31 = vector.shape_cast %30 : vector<10xf32> to vector<10x1xf32>
    %cst_23 = arith.constant 3.200000e+01 : f32
    %32 = vector.broadcast %cst_23 : f32 to vector<10x1xf32>
    %33 = arith.divf %31, %32 : vector<10x1xf32>
    %cst_24 = arith.constant 9.99999997E-7 : f32
    %34 = vector.broadcast %cst_24 : f32 to vector<10x1xf32>
    %35 = arith.addf %33, %34 : vector<10x1xf32>
    %36 = math.rsqrt %35 : vector<10x1xf32>
    %37 = vector.broadcast %36 : vector<10x1xf32> to vector<10x32xf32>
    %38 = arith.mulf %28, %37 : vector<10x32xf32>
    %39 = vector.broadcast %20 : vector<1x32xf32> to vector<10x32xf32>
    %40 = arith.mulf %38, %39 : vector<10x32xf32>
    %41 = vector.broadcast %22 : vector<1x32xf32> to vector<10x32xf32>
    %42 = arith.addf %40, %41 : vector<10x32xf32>
    %43 = arith.truncf %42 : vector<10x32xf32> to vector<10x32xbf16>
    %c0_25 = arith.constant 0 : index
    %c0_26 = arith.constant 0 : index
    %c0_27 = arith.constant 0 : index
    %44 = vector.load %arg8[%c0_25, %c0_26, %c0_27] : memref<2x32x96xbf16, #tpu.memory_space<vmem>>, vector<1x32x96xbf16>
    %45 = vector.shape_cast %44 : vector<1x32x96xbf16> to vector<32x96xbf16>
    %cst_28 = arith.constant dense<0.000000e+00> : vector<10x96xf32>
    %46 = tpu.matmul %43, %45, %cst_28 {dimension_numbers = #tpu.dot_dimension_numbers<[1], [0], [0], [1], [0, 0, 1, 1], [], []>} : vector<10x32xbf16>, vector<32x96xbf16>, vector<10x96xf32> -> vector<10x96xf32>
    %c0_29 = arith.constant 0 : index
    %c0_30 = arith.constant 0 : index
    %c0_31 = arith.constant 0 : index
    %47 = vector.load %arg9[%c0_29, %c0_30, %c0_31] : memref<2x1x96xf32, #tpu.memory_space<vmem>>, vector<1x1x96xf32>
    %48 = vector.shape_cast %47 : vector<1x1x96xf32> to vector<1x96xf32>
    %49 = vector.broadcast %48 : vector<1x96xf32> to vector<10x96xf32>
    %50 = arith.addf %46, %49 : vector<10x96xf32>
    %51 = vector.extract_strided_slice %50 {offsets = [0, 0], sizes = [5, 32], strides = [1, 1]} : vector<10x96xf32> to vector<5x32xf32>
    %52 = vector.extract_strided_slice %50 {offsets = [0, 32], sizes = [5, 32], strides = [1, 1]} : vector<10x96xf32> to vector<5x32xf32>
    %53 = vector.extract_strided_slice %50 {offsets = [0, 64], sizes = [5, 32], strides = [1, 1]} : vector<10x96xf32> to vector<5x32xf32>
    %54 = arith.truncf %53 : vector<5x32xf32> to vector<5x32xbf16>
    %55 = vector.extract_strided_slice %51 {offsets = [0, 0], sizes = [5, 16], strides = [1, 1]} : vector<5x32xf32> to vector<5x16xf32>
    %56 = arith.truncf %55 : vector<5x16xf32> to vector<5x16xbf16>
    %57 = vector.extract_strided_slice %52 {offsets = [0, 0], sizes = [5, 16], strides = [1, 1]} : vector<5x32xf32> to vector<5x16xf32>
    %58 = arith.truncf %57 : vector<5x16xf32> to vector<5x16xbf16>
    %cst_32 = arith.constant dense<0.000000e+00> : vector<5x5xf32>
    %59 = tpu.matmul %56, %58, %cst_32 {dimension_numbers = #tpu.dot_dimension_numbers<[1], [1], [0], [0], [0, 0, 1, 0], [], []>} : vector<5x16xbf16>, vector<5x16xbf16>, vector<5x5xf32> -> vector<5x5xf32>
    %cst_33 = arith.constant dense<0xFF800000> : vector<5xf32>
    %60 = vector.multi_reduction <maximumf>, %59, %cst_33 [1] : vector<5x5xf32> to vector<5xf32>
    %61 = vector.shape_cast %60 : vector<5xf32> to vector<5x1xf32>
    %62 = vector.broadcast %61 : vector<5x1xf32> to vector<5x5xf32>
    %63 = arith.subf %59, %62 : vector<5x5xf32>
    %64 = math.exp %63 : vector<5x5xf32>
    %cst_34 = arith.constant dense<0.000000e+00> : vector<5xf32>
    %65 = vector.multi_reduction <add>, %64, %cst_34 [1] : vector<5x5xf32> to vector<5xf32>
    %66 = vector.shape_cast %65 : vector<5xf32> to vector<5x1xf32>
    %67 = tpu.reciprocal %66 {approx = true} : vector<5x1xf32> -> vector<5x1xf32>
    %68 = vector.broadcast %67 : vector<5x1xf32> to vector<5x5xf32>
    %69 = arith.mulf %64, %68 : vector<5x5xf32>
    %70 = arith.truncf %69 : vector<5x5xf32> to vector<5x5xbf16>
    %71 = vector.extract_strided_slice %54 {offsets = [0, 0], sizes = [5, 16], strides = [1, 1]} : vector<5x32xbf16> to vector<5x16xbf16>
    %cst_35 = arith.constant dense<0.000000e+00> : vector<5x16xf32>
    %72 = tpu.matmul %70, %71, %cst_35 {dimension_numbers = #tpu.dot_dimension_numbers<[1], [0], [0], [1], [0, 0, 1, 1], [], []>} : vector<5x5xbf16>, vector<5x16xbf16>, vector<5x16xf32> -> vector<5x16xf32>
    %73 = vector.extract_strided_slice %51 {offsets = [0, 16], sizes = [5, 16], strides = [1, 1]} : vector<5x32xf32> to vector<5x16xf32>
    %74 = arith.truncf %73 : vector<5x16xf32> to vector<5x16xbf16>
    %75 = vector.extract_strided_slice %52 {offsets = [0, 16], sizes = [5, 16], strides = [1, 1]} : vector<5x32xf32> to vector<5x16xf32>
    %76 = arith.truncf %75 : vector<5x16xf32> to vector<5x16xbf16>
    %cst_36 = arith.constant dense<0.000000e+00> : vector<5x5xf32>
    %77 = tpu.matmul %74, %76, %cst_36 {dimension_numbers = #tpu.dot_dimension_numbers<[1], [1], [0], [0], [0, 0, 1, 0], [], []>} : vector<5x16xbf16>, vector<5x16xbf16>, vector<5x5xf32> -> vector<5x5xf32>
    %cst_37 = arith.constant dense<0xFF800000> : vector<5xf32>
    %78 = vector.multi_reduction <maximumf>, %77, %cst_37 [1] : vector<5x5xf32> to vector<5xf32>
    %79 = vector.shape_cast %78 : vector<5xf32> to vector<5x1xf32>
    %80 = vector.broadcast %79 : vector<5x1xf32> to vector<5x5xf32>
    %81 = arith.subf %77, %80 : vector<5x5xf32>
    %82 = math.exp %81 : vector<5x5xf32>
    %cst_38 = arith.constant dense<0.000000e+00> : vector<5xf32>
    %83 = vector.multi_reduction <add>, %82, %cst_38 [1] : vector<5x5xf32> to vector<5xf32>
    %84 = vector.shape_cast %83 : vector<5xf32> to vector<5x1xf32>
    %85 = tpu.reciprocal %84 {approx = true} : vector<5x1xf32> -> vector<5x1xf32>
    %86 = vector.broadcast %85 : vector<5x1xf32> to vector<5x5xf32>
    %87 = arith.mulf %82, %86 : vector<5x5xf32>
    %88 = arith.truncf %87 : vector<5x5xf32> to vector<5x5xbf16>
    %89 = vector.extract_strided_slice %54 {offsets = [0, 16], sizes = [5, 16], strides = [1, 1]} : vector<5x32xbf16> to vector<5x16xbf16>
    %cst_39 = arith.constant dense<0.000000e+00> : vector<5x16xf32>
    %90 = tpu.matmul %88, %89, %cst_39 {dimension_numbers = #tpu.dot_dimension_numbers<[1], [0], [0], [1], [0, 0, 1, 1], [], []>} : vector<5x5xbf16>, vector<5x16xbf16>, vector<5x16xf32> -> vector<5x16xf32>
    %91 = tpu.concatenate %72, %90 in 1 : vector<5x16xf32>, vector<5x16xf32> -> vector<5x32xf32>
    %92 = vector.extract_strided_slice %50 {offsets = [5, 0], sizes = [5, 32], strides = [1, 1]} : vector<10x96xf32> to vector<5x32xf32>
    %93 = vector.extract_strided_slice %50 {offsets = [5, 32], sizes = [5, 32], strides = [1, 1]} : vector<10x96xf32> to vector<5x32xf32>
    %94 = vector.extract_strided_slice %50 {offsets = [5, 64], sizes = [5, 32], strides = [1, 1]} : vector<10x96xf32> to vector<5x32xf32>
    %95 = arith.truncf %94 : vector<5x32xf32> to vector<5x32xbf16>
    %96 = vector.extract_strided_slice %92 {offsets = [0, 0], sizes = [5, 16], strides = [1, 1]} : vector<5x32xf32> to vector<5x16xf32>
    %97 = arith.truncf %96 : vector<5x16xf32> to vector<5x16xbf16>
    %98 = vector.extract_strided_slice %93 {offsets = [0, 0], sizes = [5, 16], strides = [1, 1]} : vector<5x32xf32> to vector<5x16xf32>
    %99 = arith.truncf %98 : vector<5x16xf32> to vector<5x16xbf16>
    %cst_40 = arith.constant dense<0.000000e+00> : vector<5x5xf32>
    %100 = tpu.matmul %97, %99, %cst_40 {dimension_numbers = #tpu.dot_dimension_numbers<[1], [1], [0], [0], [0, 0, 1, 0], [], []>} : vector<5x16xbf16>, vector<5x16xbf16>, vector<5x5xf32> -> vector<5x5xf32>
    %cst_41 = arith.constant dense<0xFF800000> : vector<5xf32>
    %101 = vector.multi_reduction <maximumf>, %100, %cst_41 [1] : vector<5x5xf32> to vector<5xf32>
    %102 = vector.shape_cast %101 : vector<5xf32> to vector<5x1xf32>
    %103 = vector.broadcast %102 : vector<5x1xf32> to vector<5x5xf32>
    %104 = arith.subf %100, %103 : vector<5x5xf32>
    %105 = math.exp %104 : vector<5x5xf32>
    %cst_42 = arith.constant dense<0.000000e+00> : vector<5xf32>
    %106 = vector.multi_reduction <add>, %105, %cst_42 [1] : vector<5x5xf32> to vector<5xf32>
    %107 = vector.shape_cast %106 : vector<5xf32> to vector<5x1xf32>
    %108 = tpu.reciprocal %107 {approx = true} : vector<5x1xf32> -> vector<5x1xf32>
    %109 = vector.broadcast %108 : vector<5x1xf32> to vector<5x5xf32>
    %110 = arith.mulf %105, %109 : vector<5x5xf32>
    %111 = arith.truncf %110 : vector<5x5xf32> to vector<5x5xbf16>
    %112 = vector.extract_strided_slice %95 {offsets = [0, 0], sizes = [5, 16], strides = [1, 1]} : vector<5x32xbf16> to vector<5x16xbf16>
    %cst_43 = arith.constant dense<0.000000e+00> : vector<5x16xf32>
    %113 = tpu.matmul %111, %112, %cst_43 {dimension_numbers = #tpu.dot_dimension_numbers<[1], [0], [0], [1], [0, 0, 1, 1], [], []>} : vector<5x5xbf16>, vector<5x16xbf16>, vector<5x16xf32> -> vector<5x16xf32>
    %114 = vector.extract_strided_slice %92 {offsets = [0, 16], sizes = [5, 16], strides = [1, 1]} : vector<5x32xf32> to vector<5x16xf32>
    %115 = arith.truncf %114 : vector<5x16xf32> to vector<5x16xbf16>
    %116 = vector.extract_strided_slice %93 {offsets = [0, 16], sizes = [5, 16], strides = [1, 1]} : vector<5x32xf32> to vector<5x16xf32>
    %117 = arith.truncf %116 : vector<5x16xf32> to vector<5x16xbf16>
    %cst_44 = arith.constant dense<0.000000e+00> : vector<5x5xf32>
    %118 = tpu.matmul %115, %117, %cst_44 {dimension_numbers = #tpu.dot_dimension_numbers<[1], [1], [0], [0], [0, 0, 1, 0], [], []>} : vector<5x16xbf16>, vector<5x16xbf16>, vector<5x5xf32> -> vector<5x5xf32>
    %cst_45 = arith.constant dense<0xFF800000> : vector<5xf32>
    %119 = vector.multi_reduction <maximumf>, %118, %cst_45 [1] : vector<5x5xf32> to vector<5xf32>
    %120 = vector.shape_cast %119 : vector<5xf32> to vector<5x1xf32>
    %121 = vector.broadcast %120 : vector<5x1xf32> to vector<5x5xf32>
    %122 = arith.subf %118, %121 : vector<5x5xf32>
    %123 = math.exp %122 : vector<5x5xf32>
    %cst_46 = arith.constant dense<0.000000e+00> : vector<5xf32>
    %124 = vector.multi_reduction <add>, %123, %cst_46 [1] : vector<5x5xf32> to vector<5xf32>
    %125 = vector.shape_cast %124 : vector<5xf32> to vector<5x1xf32>
    %126 = tpu.reciprocal %125 {approx = true} : vector<5x1xf32> -> vector<5x1xf32>
    %127 = vector.broadcast %126 : vector<5x1xf32> to vector<5x5xf32>
    %128 = arith.mulf %123, %127 : vector<5x5xf32>
    %129 = arith.truncf %128 : vector<5x5xf32> to vector<5x5xbf16>
    %130 = vector.extract_strided_slice %95 {offsets = [0, 16], sizes = [5, 16], strides = [1, 1]} : vector<5x32xbf16> to vector<5x16xbf16>
    %cst_47 = arith.constant dense<0.000000e+00> : vector<5x16xf32>
    %131 = tpu.matmul %129, %130, %cst_47 {dimension_numbers = #tpu.dot_dimension_numbers<[1], [0], [0], [1], [0, 0, 1, 1], [], []>} : vector<5x5xbf16>, vector<5x16xbf16>, vector<5x16xf32> -> vector<5x16xf32>
    %132 = tpu.concatenate %113, %131 in 1 : vector<5x16xf32>, vector<5x16xf32> -> vector<5x32xf32>
    %133 = tpu.concatenate %91, %132 in 0 : vector<5x32xf32>, vector<5x32xf32> -> vector<10x32xf32>
    %134 = arith.truncf %133 : vector<10x32xf32> to vector<10x32xbf16>
    %c0_48 = arith.constant 0 : index
    %c0_49 = arith.constant 0 : index
    %c0_50 = arith.constant 0 : index
    %135 = vector.load %arg10[%c0_48, %c0_49, %c0_50] : memref<2x32x32xbf16, #tpu.memory_space<vmem>>, vector<1x32x32xbf16>
    %136 = vector.shape_cast %135 : vector<1x32x32xbf16> to vector<32x32xbf16>
    %cst_51 = arith.constant dense<0.000000e+00> : vector<10x32xf32>
    %137 = tpu.matmul %134, %136, %cst_51 {dimension_numbers = #tpu.dot_dimension_numbers<[1], [0], [0], [1], [0, 0, 1, 1], [], []>} : vector<10x32xbf16>, vector<32x32xbf16>, vector<10x32xf32> -> vector<10x32xf32>
    %c0_52 = arith.constant 0 : index
    %c0_53 = arith.constant 0 : index
    %c0_54 = arith.constant 0 : index
    %138 = vector.load %arg11[%c0_52, %c0_53, %c0_54] : memref<2x1x32xf32, #tpu.memory_space<vmem>>, vector<1x1x32xf32>
    %139 = vector.shape_cast %138 : vector<1x1x32xf32> to vector<1x32xf32>
    %140 = vector.broadcast %139 : vector<1x32xf32> to vector<10x32xf32>
    %141 = arith.addf %137, %140 : vector<10x32xf32>
    %c0_55 = arith.constant 0 : index
    %c0_56 = arith.constant 0 : index
    %c0_57 = arith.constant 0 : index
    %142 = vector.load %arg12[%c0_55, %c0_56, %c0_57] : memref<2x1x32xf32, #tpu.memory_space<vmem>>, vector<1x1x32xf32>
    %143 = vector.shape_cast %142 : vector<1x1x32xf32> to vector<1x32xf32>
    %144 = vector.broadcast %143 : vector<1x32xf32> to vector<10x32xf32>
    %145 = arith.mulf %144, %141 : vector<10x32xf32>
    %146 = arith.addf %18, %145 : vector<10x32xf32>
    %c0_58 = arith.constant 0 : index
    %c0_59 = arith.constant 0 : index
    %c0_60 = arith.constant 0 : index
    %147 = vector.load %arg13[%c0_58, %c0_59, %c0_60] : memref<2x1x32xf32, #tpu.memory_space<vmem>>, vector<1x1x32xf32>
    %148 = vector.shape_cast %147 : vector<1x1x32xf32> to vector<1x32xf32>
    %c0_61 = arith.constant 0 : index
    %c0_62 = arith.constant 0 : index
    %c0_63 = arith.constant 0 : index
    %149 = vector.load %arg14[%c0_61, %c0_62, %c0_63] : memref<2x1x32xf32, #tpu.memory_space<vmem>>, vector<1x1x32xf32>
    %150 = vector.shape_cast %149 : vector<1x1x32xf32> to vector<1x32xf32>
    %cst_64 = arith.constant dense<0.000000e+00> : vector<10xf32>
    %151 = vector.multi_reduction <add>, %146, %cst_64 [1] : vector<10x32xf32> to vector<10xf32>
    %152 = vector.shape_cast %151 : vector<10xf32> to vector<10x1xf32>
    %cst_65 = arith.constant 3.200000e+01 : f32
    %153 = vector.broadcast %cst_65 : f32 to vector<10x1xf32>
    %154 = arith.divf %152, %153 : vector<10x1xf32>
    %155 = vector.broadcast %154 : vector<10x1xf32> to vector<10x32xf32>
    %156 = arith.subf %146, %155 : vector<10x32xf32>
    %157 = arith.mulf %156, %156 : vector<10x32xf32>
    %cst_66 = arith.constant dense<0.000000e+00> : vector<10xf32>
    %158 = vector.multi_reduction <add>, %157, %cst_66 [1] : vector<10x32xf32> to vector<10xf32>
    %159 = vector.shape_cast %158 : vector<10xf32> to vector<10x1xf32>
    %cst_67 = arith.constant 3.200000e+01 : f32
    %160 = vector.broadcast %cst_67 : f32 to vector<10x1xf32>
    %161 = arith.divf %159, %160 : vector<10x1xf32>
    %cst_68 = arith.constant 9.99999997E-7 : f32
    %162 = vector.broadcast %cst_68 : f32 to vector<10x1xf32>
    %163 = arith.addf %161, %162 : vector<10x1xf32>
    %164 = math.rsqrt %163 : vector<10x1xf32>
    %165 = vector.broadcast %164 : vector<10x1xf32> to vector<10x32xf32>
    %166 = arith.mulf %156, %165 : vector<10x32xf32>
    %167 = vector.broadcast %148 : vector<1x32xf32> to vector<10x32xf32>
    %168 = arith.mulf %166, %167 : vector<10x32xf32>
    %169 = vector.broadcast %150 : vector<1x32xf32> to vector<10x32xf32>
    %170 = arith.addf %168, %169 : vector<10x32xf32>
    %171 = arith.truncf %170 : vector<10x32xf32> to vector<10x32xbf16>
    %c0_69 = arith.constant 0 : index
    %c0_70 = arith.constant 0 : index
    %c0_71 = arith.constant 0 : index
    %172 = vector.load %arg15[%c0_69, %c0_70, %c0_71] : memref<2x32x128xbf16, #tpu.memory_space<vmem>>, vector<1x32x128xbf16>
    %173 = vector.shape_cast %172 : vector<1x32x128xbf16> to vector<32x128xbf16>
    %cst_72 = arith.constant dense<0.000000e+00> : vector<10x128xf32>
    %174 = tpu.matmul %171, %173, %cst_72 {dimension_numbers = #tpu.dot_dimension_numbers<[1], [0], [0], [1], [0, 0, 1, 1], [], []>} : vector<10x32xbf16>, vector<32x128xbf16>, vector<10x128xf32> -> vector<10x128xf32>
    %c0_73 = arith.constant 0 : index
    %c0_74 = arith.constant 0 : index
    %c0_75 = arith.constant 0 : index
    %175 = vector.load %arg16[%c0_73, %c0_74, %c0_75] : memref<2x1x128xf32, #tpu.memory_space<vmem>>, vector<1x1x128xf32>
    %176 = vector.shape_cast %175 : vector<1x1x128xf32> to vector<1x128xf32>
    %177 = vector.broadcast %176 : vector<1x128xf32> to vector<10x128xf32>
    %178 = arith.addf %174, %177 : vector<10x128xf32>
    %179 = arith.mulf %178, %178 : vector<10x128xf32>
    %180 = arith.mulf %178, %179 : vector<10x128xf32>
    %cst_76 = arith.constant 4.471500e-02 : f32
    %181 = vector.broadcast %cst_76 : f32 to vector<10x128xf32>
    %182 = arith.mulf %181, %180 : vector<10x128xf32>
    %183 = arith.addf %178, %182 : vector<10x128xf32>
    %cst_77 = arith.constant 0.797884583 : f32
    %184 = vector.broadcast %cst_77 : f32 to vector<10x128xf32>
    %185 = arith.mulf %184, %183 : vector<10x128xf32>
    %186 = math.tanh %185 : vector<10x128xf32>
    %cst_78 = arith.constant 1.000000e+00 : f32
    %187 = vector.broadcast %cst_78 : f32 to vector<10x128xf32>
    %188 = arith.addf %187, %186 : vector<10x128xf32>
    %cst_79 = arith.constant 5.000000e-01 : f32
    %189 = vector.broadcast %cst_79 : f32 to vector<10x128xf32>
    %190 = arith.mulf %189, %188 : vector<10x128xf32>
    %191 = arith.mulf %178, %190 : vector<10x128xf32>
    %192 = arith.truncf %191 : vector<10x128xf32> to vector<10x128xbf16>
    %c0_80 = arith.constant 0 : index
    %c0_81 = arith.constant 0 : index
    %c0_82 = arith.constant 0 : index
    %193 = vector.load %arg17[%c0_80, %c0_81, %c0_82] : memref<2x128x32xbf16, #tpu.memory_space<vmem>>, vector<1x128x32xbf16>
    %194 = vector.shape_cast %193 : vector<1x128x32xbf16> to vector<128x32xbf16>
    %cst_83 = arith.constant dense<0.000000e+00> : vector<10x32xf32>
    %195 = tpu.matmul %192, %194, %cst_83 {dimension_numbers = #tpu.dot_dimension_numbers<[1], [0], [0], [1], [0, 0, 1, 1], [], []>} : vector<10x128xbf16>, vector<128x32xbf16>, vector<10x32xf32> -> vector<10x32xf32>
    %c0_84 = arith.constant 0 : index
    %c0_85 = arith.constant 0 : index
    %c0_86 = arith.constant 0 : index
    %196 = vector.load %arg18[%c0_84, %c0_85, %c0_86] : memref<2x1x32xf32, #tpu.memory_space<vmem>>, vector<1x1x32xf32>
    %197 = vector.shape_cast %196 : vector<1x1x32xf32> to vector<1x32xf32>
    %198 = vector.broadcast %197 : vector<1x32xf32> to vector<10x32xf32>
    %199 = arith.addf %195, %198 : vector<10x32xf32>
    %c0_87 = arith.constant 0 : index
    %c0_88 = arith.constant 0 : index
    %c0_89 = arith.constant 0 : index
    %200 = vector.load %arg19[%c0_87, %c0_88, %c0_89] : memref<2x1x32xf32, #tpu.memory_space<vmem>>, vector<1x1x32xf32>
    %201 = vector.shape_cast %200 : vector<1x1x32xf32> to vector<1x32xf32>
    %202 = vector.broadcast %201 : vector<1x32xf32> to vector<10x32xf32>
    %203 = arith.mulf %202, %199 : vector<10x32xf32>
    %204 = arith.addf %146, %203 : vector<10x32xf32>
    %c1_90 = arith.constant 1 : index
    %c0_91 = arith.constant 0 : index
    %c0_92 = arith.constant 0 : index
    %205 = vector.load %arg6[%c1_90, %c0_91, %c0_92] : memref<2x1x32xf32, #tpu.memory_space<vmem>>, vector<1x1x32xf32>
    %206 = vector.shape_cast %205 : vector<1x1x32xf32> to vector<1x32xf32>
    %c1_93 = arith.constant 1 : index
    %c0_94 = arith.constant 0 : index
    %c0_95 = arith.constant 0 : index
    %207 = vector.load %arg7[%c1_93, %c0_94, %c0_95] : memref<2x1x32xf32, #tpu.memory_space<vmem>>, vector<1x1x32xf32>
    %208 = vector.shape_cast %207 : vector<1x1x32xf32> to vector<1x32xf32>
    %cst_96 = arith.constant dense<0.000000e+00> : vector<10xf32>
    %209 = vector.multi_reduction <add>, %204, %cst_96 [1] : vector<10x32xf32> to vector<10xf32>
    %210 = vector.shape_cast %209 : vector<10xf32> to vector<10x1xf32>
    %cst_97 = arith.constant 3.200000e+01 : f32
    %211 = vector.broadcast %cst_97 : f32 to vector<10x1xf32>
    %212 = arith.divf %210, %211 : vector<10x1xf32>
    %213 = vector.broadcast %212 : vector<10x1xf32> to vector<10x32xf32>
    %214 = arith.subf %204, %213 : vector<10x32xf32>
    %215 = arith.mulf %214, %214 : vector<10x32xf32>
    %cst_98 = arith.constant dense<0.000000e+00> : vector<10xf32>
    %216 = vector.multi_reduction <add>, %215, %cst_98 [1] : vector<10x32xf32> to vector<10xf32>
    %217 = vector.shape_cast %216 : vector<10xf32> to vector<10x1xf32>
    %cst_99 = arith.constant 3.200000e+01 : f32
    %218 = vector.broadcast %cst_99 : f32 to vector<10x1xf32>
    %219 = arith.divf %217, %218 : vector<10x1xf32>
    %cst_100 = arith.constant 9.99999997E-7 : f32
    %220 = vector.broadcast %cst_100 : f32 to vector<10x1xf32>
    %221 = arith.addf %219, %220 : vector<10x1xf32>
    %222 = math.rsqrt %221 : vector<10x1xf32>
    %223 = vector.broadcast %222 : vector<10x1xf32> to vector<10x32xf32>
    %224 = arith.mulf %214, %223 : vector<10x32xf32>
    %225 = vector.broadcast %206 : vector<1x32xf32> to vector<10x32xf32>
    %226 = arith.mulf %224, %225 : vector<10x32xf32>
    %227 = vector.broadcast %208 : vector<1x32xf32> to vector<10x32xf32>
    %228 = arith.addf %226, %227 : vector<10x32xf32>
    %229 = arith.truncf %228 : vector<10x32xf32> to vector<10x32xbf16>
    %c1_101 = arith.constant 1 : index
    %c0_102 = arith.constant 0 : index
    %c0_103 = arith.constant 0 : index
    %230 = vector.load %arg8[%c1_101, %c0_102, %c0_103] : memref<2x32x96xbf16, #tpu.memory_space<vmem>>, vector<1x32x96xbf16>
    %231 = vector.shape_cast %230 : vector<1x32x96xbf16> to vector<32x96xbf16>
    %cst_104 = arith.constant dense<0.000000e+00> : vector<10x96xf32>
    %232 = tpu.matmul %229, %231, %cst_104 {dimension_numbers = #tpu.dot_dimension_numbers<[1], [0], [0], [1], [0, 0, 1, 1], [], []>} : vector<10x32xbf16>, vector<32x96xbf16>, vector<10x96xf32> -> vector<10x96xf32>
    %c1_105 = arith.constant 1 : index
    %c0_106 = arith.constant 0 : index
    %c0_107 = arith.constant 0 : index
    %233 = vector.load %arg9[%c1_105, %c0_106, %c0_107] : memref<2x1x96xf32, #tpu.memory_space<vmem>>, vector<1x1x96xf32>
    %234 = vector.shape_cast %233 : vector<1x1x96xf32> to vector<1x96xf32>
    %235 = vector.broadcast %234 : vector<1x96xf32> to vector<10x96xf32>
    %236 = arith.addf %232, %235 : vector<10x96xf32>
    %237 = vector.extract_strided_slice %236 {offsets = [0, 0], sizes = [5, 32], strides = [1, 1]} : vector<10x96xf32> to vector<5x32xf32>
    %238 = vector.extract_strided_slice %236 {offsets = [0, 32], sizes = [5, 32], strides = [1, 1]} : vector<10x96xf32> to vector<5x32xf32>
    %239 = vector.extract_strided_slice %236 {offsets = [0, 64], sizes = [5, 32], strides = [1, 1]} : vector<10x96xf32> to vector<5x32xf32>
    %240 = arith.truncf %239 : vector<5x32xf32> to vector<5x32xbf16>
    %241 = vector.extract_strided_slice %237 {offsets = [0, 0], sizes = [5, 16], strides = [1, 1]} : vector<5x32xf32> to vector<5x16xf32>
    %242 = arith.truncf %241 : vector<5x16xf32> to vector<5x16xbf16>
    %243 = vector.extract_strided_slice %238 {offsets = [0, 0], sizes = [5, 16], strides = [1, 1]} : vector<5x32xf32> to vector<5x16xf32>
    %244 = arith.truncf %243 : vector<5x16xf32> to vector<5x16xbf16>
    %cst_108 = arith.constant dense<0.000000e+00> : vector<5x5xf32>
    %245 = tpu.matmul %242, %244, %cst_108 {dimension_numbers = #tpu.dot_dimension_numbers<[1], [1], [0], [0], [0, 0, 1, 0], [], []>} : vector<5x16xbf16>, vector<5x16xbf16>, vector<5x5xf32> -> vector<5x5xf32>
    %cst_109 = arith.constant dense<0xFF800000> : vector<5xf32>
    %246 = vector.multi_reduction <maximumf>, %245, %cst_109 [1] : vector<5x5xf32> to vector<5xf32>
    %247 = vector.shape_cast %246 : vector<5xf32> to vector<5x1xf32>
    %248 = vector.broadcast %247 : vector<5x1xf32> to vector<5x5xf32>
    %249 = arith.subf %245, %248 : vector<5x5xf32>
    %250 = math.exp %249 : vector<5x5xf32>
    %cst_110 = arith.constant dense<0.000000e+00> : vector<5xf32>
    %251 = vector.multi_reduction <add>, %250, %cst_110 [1] : vector<5x5xf32> to vector<5xf32>
    %252 = vector.shape_cast %251 : vector<5xf32> to vector<5x1xf32>
    %253 = tpu.reciprocal %252 {approx = true} : vector<5x1xf32> -> vector<5x1xf32>
    %254 = vector.broadcast %253 : vector<5x1xf32> to vector<5x5xf32>
    %255 = arith.mulf %250, %254 : vector<5x5xf32>
    %256 = arith.truncf %255 : vector<5x5xf32> to vector<5x5xbf16>
    %257 = vector.extract_strided_slice %240 {offsets = [0, 0], sizes = [5, 16], strides = [1, 1]} : vector<5x32xbf16> to vector<5x16xbf16>
    %cst_111 = arith.constant dense<0.000000e+00> : vector<5x16xf32>
    %258 = tpu.matmul %256, %257, %cst_111 {dimension_numbers = #tpu.dot_dimension_numbers<[1], [0], [0], [1], [0, 0, 1, 1], [], []>} : vector<5x5xbf16>, vector<5x16xbf16>, vector<5x16xf32> -> vector<5x16xf32>
    %259 = vector.extract_strided_slice %237 {offsets = [0, 16], sizes = [5, 16], strides = [1, 1]} : vector<5x32xf32> to vector<5x16xf32>
    %260 = arith.truncf %259 : vector<5x16xf32> to vector<5x16xbf16>
    %261 = vector.extract_strided_slice %238 {offsets = [0, 16], sizes = [5, 16], strides = [1, 1]} : vector<5x32xf32> to vector<5x16xf32>
    %262 = arith.truncf %261 : vector<5x16xf32> to vector<5x16xbf16>
    %cst_112 = arith.constant dense<0.000000e+00> : vector<5x5xf32>
    %263 = tpu.matmul %260, %262, %cst_112 {dimension_numbers = #tpu.dot_dimension_numbers<[1], [1], [0], [0], [0, 0, 1, 0], [], []>} : vector<5x16xbf16>, vector<5x16xbf16>, vector<5x5xf32> -> vector<5x5xf32>
    %cst_113 = arith.constant dense<0xFF800000> : vector<5xf32>
    %264 = vector.multi_reduction <maximumf>, %263, %cst_113 [1] : vector<5x5xf32> to vector<5xf32>
    %265 = vector.shape_cast %264 : vector<5xf32> to vector<5x1xf32>
    %266 = vector.broadcast %265 : vector<5x1xf32> to vector<5x5xf32>
    %267 = arith.subf %263, %266 : vector<5x5xf32>
    %268 = math.exp %267 : vector<5x5xf32>
    %cst_114 = arith.constant dense<0.000000e+00> : vector<5xf32>
    %269 = vector.multi_reduction <add>, %268, %cst_114 [1] : vector<5x5xf32> to vector<5xf32>
    %270 = vector.shape_cast %269 : vector<5xf32> to vector<5x1xf32>
    %271 = tpu.reciprocal %270 {approx = true} : vector<5x1xf32> -> vector<5x1xf32>
    %272 = vector.broadcast %271 : vector<5x1xf32> to vector<5x5xf32>
    %273 = arith.mulf %268, %272 : vector<5x5xf32>
    %274 = arith.truncf %273 : vector<5x5xf32> to vector<5x5xbf16>
    %275 = vector.extract_strided_slice %240 {offsets = [0, 16], sizes = [5, 16], strides = [1, 1]} : vector<5x32xbf16> to vector<5x16xbf16>
    %cst_115 = arith.constant dense<0.000000e+00> : vector<5x16xf32>
    %276 = tpu.matmul %274, %275, %cst_115 {dimension_numbers = #tpu.dot_dimension_numbers<[1], [0], [0], [1], [0, 0, 1, 1], [], []>} : vector<5x5xbf16>, vector<5x16xbf16>, vector<5x16xf32> -> vector<5x16xf32>
    %277 = tpu.concatenate %258, %276 in 1 : vector<5x16xf32>, vector<5x16xf32> -> vector<5x32xf32>
    %278 = vector.extract_strided_slice %236 {offsets = [5, 0], sizes = [5, 32], strides = [1, 1]} : vector<10x96xf32> to vector<5x32xf32>
    %279 = vector.extract_strided_slice %236 {offsets = [5, 32], sizes = [5, 32], strides = [1, 1]} : vector<10x96xf32> to vector<5x32xf32>
    %280 = vector.extract_strided_slice %236 {offsets = [5, 64], sizes = [5, 32], strides = [1, 1]} : vector<10x96xf32> to vector<5x32xf32>
    %281 = arith.truncf %280 : vector<5x32xf32> to vector<5x32xbf16>
    %282 = vector.extract_strided_slice %278 {offsets = [0, 0], sizes = [5, 16], strides = [1, 1]} : vector<5x32xf32> to vector<5x16xf32>
    %283 = arith.truncf %282 : vector<5x16xf32> to vector<5x16xbf16>
    %284 = vector.extract_strided_slice %279 {offsets = [0, 0], sizes = [5, 16], strides = [1, 1]} : vector<5x32xf32> to vector<5x16xf32>
    %285 = arith.truncf %284 : vector<5x16xf32> to vector<5x16xbf16>
    %cst_116 = arith.constant dense<0.000000e+00> : vector<5x5xf32>
    %286 = tpu.matmul %283, %285, %cst_116 {dimension_numbers = #tpu.dot_dimension_numbers<[1], [1], [0], [0], [0, 0, 1, 0], [], []>} : vector<5x16xbf16>, vector<5x16xbf16>, vector<5x5xf32> -> vector<5x5xf32>
    %cst_117 = arith.constant dense<0xFF800000> : vector<5xf32>
    %287 = vector.multi_reduction <maximumf>, %286, %cst_117 [1] : vector<5x5xf32> to vector<5xf32>
    %288 = vector.shape_cast %287 : vector<5xf32> to vector<5x1xf32>
    %289 = vector.broadcast %288 : vector<5x1xf32> to vector<5x5xf32>
    %290 = arith.subf %286, %289 : vector<5x5xf32>
    %291 = math.exp %290 : vector<5x5xf32>
    %cst_118 = arith.constant dense<0.000000e+00> : vector<5xf32>
    %292 = vector.multi_reduction <add>, %291, %cst_118 [1] : vector<5x5xf32> to vector<5xf32>
    %293 = vector.shape_cast %292 : vector<5xf32> to vector<5x1xf32>
    %294 = tpu.reciprocal %293 {approx = true} : vector<5x1xf32> -> vector<5x1xf32>
    %295 = vector.broadcast %294 : vector<5x1xf32> to vector<5x5xf32>
    %296 = arith.mulf %291, %295 : vector<5x5xf32>
    %297 = arith.truncf %296 : vector<5x5xf32> to vector<5x5xbf16>
    %298 = vector.extract_strided_slice %281 {offsets = [0, 0], sizes = [5, 16], strides = [1, 1]} : vector<5x32xbf16> to vector<5x16xbf16>
    %cst_119 = arith.constant dense<0.000000e+00> : vector<5x16xf32>
    %299 = tpu.matmul %297, %298, %cst_119 {dimension_numbers = #tpu.dot_dimension_numbers<[1], [0], [0], [1], [0, 0, 1, 1], [], []>} : vector<5x5xbf16>, vector<5x16xbf16>, vector<5x16xf32> -> vector<5x16xf32>
    %300 = vector.extract_strided_slice %278 {offsets = [0, 16], sizes = [5, 16], strides = [1, 1]} : vector<5x32xf32> to vector<5x16xf32>
    %301 = arith.truncf %300 : vector<5x16xf32> to vector<5x16xbf16>
    %302 = vector.extract_strided_slice %279 {offsets = [0, 16], sizes = [5, 16], strides = [1, 1]} : vector<5x32xf32> to vector<5x16xf32>
    %303 = arith.truncf %302 : vector<5x16xf32> to vector<5x16xbf16>
    %cst_120 = arith.constant dense<0.000000e+00> : vector<5x5xf32>
    %304 = tpu.matmul %301, %303, %cst_120 {dimension_numbers = #tpu.dot_dimension_numbers<[1], [1], [0], [0], [0, 0, 1, 0], [], []>} : vector<5x16xbf16>, vector<5x16xbf16>, vector<5x5xf32> -> vector<5x5xf32>
    %cst_121 = arith.constant dense<0xFF800000> : vector<5xf32>
    %305 = vector.multi_reduction <maximumf>, %304, %cst_121 [1] : vector<5x5xf32> to vector<5xf32>
    %306 = vector.shape_cast %305 : vector<5xf32> to vector<5x1xf32>
    %307 = vector.broadcast %306 : vector<5x1xf32> to vector<5x5xf32>
    %308 = arith.subf %304, %307 : vector<5x5xf32>
    %309 = math.exp %308 : vector<5x5xf32>
    %cst_122 = arith.constant dense<0.000000e+00> : vector<5xf32>
    %310 = vector.multi_reduction <add>, %309, %cst_122 [1] : vector<5x5xf32> to vector<5xf32>
    %311 = vector.shape_cast %310 : vector<5xf32> to vector<5x1xf32>
    %312 = tpu.reciprocal %311 {approx = true} : vector<5x1xf32> -> vector<5x1xf32>
    %313 = vector.broadcast %312 : vector<5x1xf32> to vector<5x5xf32>
    %314 = arith.mulf %309, %313 : vector<5x5xf32>
    %315 = arith.truncf %314 : vector<5x5xf32> to vector<5x5xbf16>
    %316 = vector.extract_strided_slice %281 {offsets = [0, 16], sizes = [5, 16], strides = [1, 1]} : vector<5x32xbf16> to vector<5x16xbf16>
    %cst_123 = arith.constant dense<0.000000e+00> : vector<5x16xf32>
    %317 = tpu.matmul %315, %316, %cst_123 {dimension_numbers = #tpu.dot_dimension_numbers<[1], [0], [0], [1], [0, 0, 1, 1], [], []>} : vector<5x5xbf16>, vector<5x16xbf16>, vector<5x16xf32> -> vector<5x16xf32>
    %318 = tpu.concatenate %299, %317 in 1 : vector<5x16xf32>, vector<5x16xf32> -> vector<5x32xf32>
    %319 = tpu.concatenate %277, %318 in 0 : vector<5x32xf32>, vector<5x32xf32> -> vector<10x32xf32>
    %320 = arith.truncf %319 : vector<10x32xf32> to vector<10x32xbf16>
    %c1_124 = arith.constant 1 : index
    %c0_125 = arith.constant 0 : index
    %c0_126 = arith.constant 0 : index
    %321 = vector.load %arg10[%c1_124, %c0_125, %c0_126] : memref<2x32x32xbf16, #tpu.memory_space<vmem>>, vector<1x32x32xbf16>
    %322 = vector.shape_cast %321 : vector<1x32x32xbf16> to vector<32x32xbf16>
    %cst_127 = arith.constant dense<0.000000e+00> : vector<10x32xf32>
    %323 = tpu.matmul %320, %322, %cst_127 {dimension_numbers = #tpu.dot_dimension_numbers<[1], [0], [0], [1], [0, 0, 1, 1], [], []>} : vector<10x32xbf16>, vector<32x32xbf16>, vector<10x32xf32> -> vector<10x32xf32>
    %c1_128 = arith.constant 1 : index
    %c0_129 = arith.constant 0 : index
    %c0_130 = arith.constant 0 : index
    %324 = vector.load %arg11[%c1_128, %c0_129, %c0_130] : memref<2x1x32xf32, #tpu.memory_space<vmem>>, vector<1x1x32xf32>
    %325 = vector.shape_cast %324 : vector<1x1x32xf32> to vector<1x32xf32>
    %326 = vector.broadcast %325 : vector<1x32xf32> to vector<10x32xf32>
    %327 = arith.addf %323, %326 : vector<10x32xf32>
    %c1_131 = arith.constant 1 : index
    %c0_132 = arith.constant 0 : index
    %c0_133 = arith.constant 0 : index
    %328 = vector.load %arg12[%c1_131, %c0_132, %c0_133] : memref<2x1x32xf32, #tpu.memory_space<vmem>>, vector<1x1x32xf32>
    %329 = vector.shape_cast %328 : vector<1x1x32xf32> to vector<1x32xf32>
    %330 = vector.broadcast %329 : vector<1x32xf32> to vector<10x32xf32>
    %331 = arith.mulf %330, %327 : vector<10x32xf32>
    %332 = arith.addf %204, %331 : vector<10x32xf32>
    %c1_134 = arith.constant 1 : index
    %c0_135 = arith.constant 0 : index
    %c0_136 = arith.constant 0 : index
    %333 = vector.load %arg13[%c1_134, %c0_135, %c0_136] : memref<2x1x32xf32, #tpu.memory_space<vmem>>, vector<1x1x32xf32>
    %334 = vector.shape_cast %333 : vector<1x1x32xf32> to vector<1x32xf32>
    %c1_137 = arith.constant 1 : index
    %c0_138 = arith.constant 0 : index
    %c0_139 = arith.constant 0 : index
    %335 = vector.load %arg14[%c1_137, %c0_138, %c0_139] : memref<2x1x32xf32, #tpu.memory_space<vmem>>, vector<1x1x32xf32>
    %336 = vector.shape_cast %335 : vector<1x1x32xf32> to vector<1x32xf32>
    %cst_140 = arith.constant dense<0.000000e+00> : vector<10xf32>
    %337 = vector.multi_reduction <add>, %332, %cst_140 [1] : vector<10x32xf32> to vector<10xf32>
    %338 = vector.shape_cast %337 : vector<10xf32> to vector<10x1xf32>
    %cst_141 = arith.constant 3.200000e+01 : f32
    %339 = vector.broadcast %cst_141 : f32 to vector<10x1xf32>
    %340 = arith.divf %338, %339 : vector<10x1xf32>
    %341 = vector.broadcast %340 : vector<10x1xf32> to vector<10x32xf32>
    %342 = arith.subf %332, %341 : vector<10x32xf32>
    %343 = arith.mulf %342, %342 : vector<10x32xf32>
    %cst_142 = arith.constant dense<0.000000e+00> : vector<10xf32>
    %344 = vector.multi_reduction <add>, %343, %cst_142 [1] : vector<10x32xf32> to vector<10xf32>
    %345 = vector.shape_cast %344 : vector<10xf32> to vector<10x1xf32>
    %cst_143 = arith.constant 3.200000e+01 : f32
    %346 = vector.broadcast %cst_143 : f32 to vector<10x1xf32>
    %347 = arith.divf %345, %346 : vector<10x1xf32>
    %cst_144 = arith.constant 9.99999997E-7 : f32
    %348 = vector.broadcast %cst_144 : f32 to vector<10x1xf32>
    %349 = arith.addf %347, %348 : vector<10x1xf32>
    %350 = math.rsqrt %349 : vector<10x1xf32>
    %351 = vector.broadcast %350 : vector<10x1xf32> to vector<10x32xf32>
    %352 = arith.mulf %342, %351 : vector<10x32xf32>
    %353 = vector.broadcast %334 : vector<1x32xf32> to vector<10x32xf32>
    %354 = arith.mulf %352, %353 : vector<10x32xf32>
    %355 = vector.broadcast %336 : vector<1x32xf32> to vector<10x32xf32>
    %356 = arith.addf %354, %355 : vector<10x32xf32>
    %357 = arith.truncf %356 : vector<10x32xf32> to vector<10x32xbf16>
    %c1_145 = arith.constant 1 : index
    %c0_146 = arith.constant 0 : index
    %c0_147 = arith.constant 0 : index
    %358 = vector.load %arg15[%c1_145, %c0_146, %c0_147] : memref<2x32x128xbf16, #tpu.memory_space<vmem>>, vector<1x32x128xbf16>
    %359 = vector.shape_cast %358 : vector<1x32x128xbf16> to vector<32x128xbf16>
    %cst_148 = arith.constant dense<0.000000e+00> : vector<10x128xf32>
    %360 = tpu.matmul %357, %359, %cst_148 {dimension_numbers = #tpu.dot_dimension_numbers<[1], [0], [0], [1], [0, 0, 1, 1], [], []>} : vector<10x32xbf16>, vector<32x128xbf16>, vector<10x128xf32> -> vector<10x128xf32>
    %c1_149 = arith.constant 1 : index
    %c0_150 = arith.constant 0 : index
    %c0_151 = arith.constant 0 : index
    %361 = vector.load %arg16[%c1_149, %c0_150, %c0_151] : memref<2x1x128xf32, #tpu.memory_space<vmem>>, vector<1x1x128xf32>
    %362 = vector.shape_cast %361 : vector<1x1x128xf32> to vector<1x128xf32>
    %363 = vector.broadcast %362 : vector<1x128xf32> to vector<10x128xf32>
    %364 = arith.addf %360, %363 : vector<10x128xf32>
    %365 = arith.mulf %364, %364 : vector<10x128xf32>
    %366 = arith.mulf %364, %365 : vector<10x128xf32>
    %cst_152 = arith.constant 4.471500e-02 : f32
    %367 = vector.broadcast %cst_152 : f32 to vector<10x128xf32>
    %368 = arith.mulf %367, %366 : vector<10x128xf32>
    %369 = arith.addf %364, %368 : vector<10x128xf32>
    %cst_153 = arith.constant 0.797884583 : f32
    %370 = vector.broadcast %cst_153 : f32 to vector<10x128xf32>
    %371 = arith.mulf %370, %369 : vector<10x128xf32>
    %372 = math.tanh %371 : vector<10x128xf32>
    %cst_154 = arith.constant 1.000000e+00 : f32
    %373 = vector.broadcast %cst_154 : f32 to vector<10x128xf32>
    %374 = arith.addf %373, %372 : vector<10x128xf32>
    %cst_155 = arith.constant 5.000000e-01 : f32
    %375 = vector.broadcast %cst_155 : f32 to vector<10x128xf32>
    %376 = arith.mulf %375, %374 : vector<10x128xf32>
    %377 = arith.mulf %364, %376 : vector<10x128xf32>
    %378 = arith.truncf %377 : vector<10x128xf32> to vector<10x128xbf16>
    %c1_156 = arith.constant 1 : index
    %c0_157 = arith.constant 0 : index
    %c0_158 = arith.constant 0 : index
    %379 = vector.load %arg17[%c1_156, %c0_157, %c0_158] : memref<2x128x32xbf16, #tpu.memory_space<vmem>>, vector<1x128x32xbf16>
    %380 = vector.shape_cast %379 : vector<1x128x32xbf16> to vector<128x32xbf16>
    %cst_159 = arith.constant dense<0.000000e+00> : vector<10x32xf32>
    %381 = tpu.matmul %378, %380, %cst_159 {dimension_numbers = #tpu.dot_dimension_numbers<[1], [0], [0], [1], [0, 0, 1, 1], [], []>} : vector<10x128xbf16>, vector<128x32xbf16>, vector<10x32xf32> -> vector<10x32xf32>
    %c1_160 = arith.constant 1 : index
    %c0_161 = arith.constant 0 : index
    %c0_162 = arith.constant 0 : index
    %382 = vector.load %arg18[%c1_160, %c0_161, %c0_162] : memref<2x1x32xf32, #tpu.memory_space<vmem>>, vector<1x1x32xf32>
    %383 = vector.shape_cast %382 : vector<1x1x32xf32> to vector<1x32xf32>
    %384 = vector.broadcast %383 : vector<1x32xf32> to vector<10x32xf32>
    %385 = arith.addf %381, %384 : vector<10x32xf32>
    %c1_163 = arith.constant 1 : index
    %c0_164 = arith.constant 0 : index
    %c0_165 = arith.constant 0 : index
    %386 = vector.load %arg19[%c1_163, %c0_164, %c0_165] : memref<2x1x32xf32, #tpu.memory_space<vmem>>, vector<1x1x32xf32>
    %387 = vector.shape_cast %386 : vector<1x1x32xf32> to vector<1x32xf32>
    %388 = vector.broadcast %387 : vector<1x32xf32> to vector<10x32xf32>
    %389 = arith.mulf %388, %385 : vector<10x32xf32>
    %390 = arith.addf %332, %389 : vector<10x32xf32>
    %c0_166 = arith.constant 0 : index
    %c0_167 = arith.constant 0 : index
    %391 = vector.load %arg20[%c0_166, %c0_167] : memref<1x32xf32, #tpu.memory_space<vmem>>, vector<1x32xf32>
    %c0_168 = arith.constant 0 : index
    %c0_169 = arith.constant 0 : index
    %392 = vector.load %arg21[%c0_168, %c0_169] : memref<1x32xf32, #tpu.memory_space<vmem>>, vector<1x32xf32>
    %cst_170 = arith.constant dense<0.000000e+00> : vector<10xf32>
    %393 = vector.multi_reduction <add>, %390, %cst_170 [1] : vector<10x32xf32> to vector<10xf32>
    %394 = vector.shape_cast %393 : vector<10xf32> to vector<10x1xf32>
    %cst_171 = arith.constant 3.200000e+01 : f32
    %395 = vector.broadcast %cst_171 : f32 to vector<10x1xf32>
    %396 = arith.divf %394, %395 : vector<10x1xf32>
    %397 = vector.broadcast %396 : vector<10x1xf32> to vector<10x32xf32>
    %398 = arith.subf %390, %397 : vector<10x32xf32>
    %399 = arith.mulf %398, %398 : vector<10x32xf32>
    %cst_172 = arith.constant dense<0.000000e+00> : vector<10xf32>
    %400 = vector.multi_reduction <add>, %399, %cst_172 [1] : vector<10x32xf32> to vector<10xf32>
    %401 = vector.shape_cast %400 : vector<10xf32> to vector<10x1xf32>
    %cst_173 = arith.constant 3.200000e+01 : f32
    %402 = vector.broadcast %cst_173 : f32 to vector<10x1xf32>
    %403 = arith.divf %401, %402 : vector<10x1xf32>
    %cst_174 = arith.constant 9.99999997E-7 : f32
    %404 = vector.broadcast %cst_174 : f32 to vector<10x1xf32>
    %405 = arith.addf %403, %404 : vector<10x1xf32>
    %406 = math.rsqrt %405 : vector<10x1xf32>
    %407 = vector.broadcast %406 : vector<10x1xf32> to vector<10x32xf32>
    %408 = arith.mulf %398, %407 : vector<10x32xf32>
    %409 = vector.broadcast %391 : vector<1x32xf32> to vector<10x32xf32>
    %410 = arith.mulf %408, %409 : vector<10x32xf32>
    %411 = vector.broadcast %392 : vector<1x32xf32> to vector<10x32xf32>
    %412 = arith.addf %410, %411 : vector<10x32xf32>
    %413 = vector.extract_strided_slice %412 {offsets = [0, 0], sizes = [1, 32], strides = [1, 1]} : vector<10x32xf32> to vector<1x32xf32>
    %414 = vector.extract_strided_slice %412 {offsets = [5, 0], sizes = [1, 32], strides = [1, 1]} : vector<10x32xf32> to vector<1x32xf32>
    %415 = tpu.concatenate %413, %414 in 0 : vector<1x32xf32>, vector<1x32xf32> -> vector<2x32xf32>
    %416 = arith.truncf %415 : vector<2x32xf32> to vector<2x32xbf16>
    %c0_175 = arith.constant 0 : index
    %c0_176 = arith.constant 0 : index
    %417 = vector.load %arg22[%c0_175, %c0_176] : memref<32x128xbf16, #tpu.memory_space<vmem>>, vector<32x128xbf16>
    %cst_177 = arith.constant dense<0.000000e+00> : vector<2x128xf32>
    %418 = tpu.matmul %416, %417, %cst_177 {dimension_numbers = #tpu.dot_dimension_numbers<[1], [0], [0], [1], [0, 0, 1, 1], [], []>} : vector<2x32xbf16>, vector<32x128xbf16>, vector<2x128xf32> -> vector<2x128xf32>
    %c0_178 = arith.constant 0 : index
    %c0_179 = arith.constant 0 : index
    %419 = vector.load %arg23[%c0_178, %c0_179] : memref<1x128xf32, #tpu.memory_space<vmem>>, vector<1x128xf32>
    %420 = vector.broadcast %419 : vector<1x128xf32> to vector<2x128xf32>
    %421 = arith.addf %418, %420 : vector<2x128xf32>
    %422 = arith.mulf %421, %421 : vector<2x128xf32>
    %cst_180 = arith.constant dense<0.000000e+00> : vector<2xf32>
    %423 = vector.multi_reduction <add>, %422, %cst_180 [1] : vector<2x128xf32> to vector<2xf32>
    %424 = vector.shape_cast %423 : vector<2xf32> to vector<2x1xf32>
    %425 = math.sqrt %424 : vector<2x1xf32>
    %cst_181 = arith.constant 9.99999996E-13 : f32
    %426 = vector.broadcast %cst_181 : f32 to vector<2x1xf32>
    %427 = arith.maximumf %425, %426 : vector<2x1xf32>
    %428 = vector.broadcast %427 : vector<2x1xf32> to vector<2x128xf32>
    %429 = arith.divf %421, %428 : vector<2x128xf32>
    %c0_182 = arith.constant 0 : index
    %c0_183 = arith.constant 0 : index
    %c0_184 = arith.constant 0 : index
    %430 = vector.load %arg24[%c0_182, %c0_183, %c0_184] : memref<1x2x128xf32, #tpu.memory_space<vmem>>, vector<1x2x128xf32>
    %431 = vector.shape_cast %430 : vector<1x2x128xf32> to vector<2x128xf32>
    %432 = vector.shape_cast %429 : vector<2x128xf32> to vector<1x2x128xf32>
    tpu.vector_store %arg24[%c0_182, %c0_183, %c0_184], %432 {strides = array<i32>} : memref<1x2x128xf32, #tpu.memory_space<vmem>>, vector<1x2x128xf32>,
    return
  }
  func.func @transform_0(%arg0: i32) -> (i32, i32, i32) {
    %c0_i32 = arith.constant 0 : i32
    %c0_i32_0 = arith.constant 0 : i32
    %c0_i32_1 = arith.constant 0 : i32
    return %arg0, %c0_i32, %c0_i32_0 : i32, i32, i32
  }
  func.func @transform_1(%arg0: i32) -> (i32, i32) {
    %c0_i32 = arith.constant 0 : i32
    %c0_i32_0 = arith.constant 0 : i32
    %c0_i32_1 = arith.constant 0 : i32
    return %c0_i32, %c0_i32_0 : i32, i32
  }
  func.func @transform_2(%arg0: i32) -> (i32, i32) {
    %c0_i32 = arith.constant 0 : i32
    %c0_i32_0 = arith.constant 0 : i32
    %c0_i32_1 = arith.constant 0 : i32
    return %c0_i32, %c0_i32_0 : i32, i32
  }
  func.func @transform_3(%arg0: i32) -> (i32, i32) {
    %c0_i32 = arith.constant 0 : i32
    %c0_i32_0 = arith.constant 0 : i32
    %c0_i32_1 = arith.constant 0 : i32
    return %c0_i32, %c0_i32_0 : i32, i32
  }
  func.func @transform_4(%arg0: i32) -> (i32, i32) {
    %c0_i32 = arith.constant 0 : i32
    %c0_i32_0 = arith.constant 0 : i32
    %c0_i32_1 = arith.constant 0 : i32
    return %c0_i32, %c0_i32_0 : i32, i32
  }
  func.func @transform_5(%arg0: i32) -> (i32, i32, i32) {
    %c0_i32 = arith.constant 0 : i32
    %c0_i32_0 = arith.constant 0 : i32
    %c0_i32_1 = arith.constant 0 : i32
    %c0_i32_2 = arith.constant 0 : i32
    return %c0_i32, %c0_i32_0, %c0_i32_1 : i32, i32, i32
  }
  func.func @transform_6(%arg0: i32) -> (i32, i32, i32) {
    %c0_i32 = arith.constant 0 : i32
    %c0_i32_0 = arith.constant 0 : i32
    %c0_i32_1 = arith.constant 0 : i32
    %c0_i32_2 = arith.constant 0 : i32
    return %c0_i32, %c0_i32_0, %c0_i32_1 : i32, i32, i32
  }
  func.func @transform_7(%arg0: i32) -> (i32, i32, i32) {
    %c0_i32 = arith.constant 0 : i32
    %c0_i32_0 = arith.constant 0 : i32
    %c0_i32_1 = arith.constant 0 : i32
    %c0_i32_2 = arith.constant 0 : i32
    return %c0_i32, %c0_i32_0, %c0_i32_1 : i32, i32, i32
  }
  func.func @transform_8(%arg0: i32) -> (i32, i32, i32) {
    %c0_i32 = arith.constant 0 : i32
    %c0_i32_0 = arith.constant 0 : i32
    %c0_i32_1 = arith.constant 0 : i32
    %c0_i32_2 = arith.constant 0 : i32
    return %c0_i32, %c0_i32_0, %c0_i32_1 : i32, i32, i32
  }
  func.func @transform_9(%arg0: i32) -> (i32, i32, i32) {
    %c0_i32 = arith.constant 0 : i32
    %c0_i32_0 = arith.constant 0 : i32
    %c0_i32_1 = arith.constant 0 : i32
    %c0_i32_2 = arith.constant 0 : i32
    return %c0_i32, %c0_i32_0, %c0_i32_1 : i32, i32, i32
  }
  func.func @transform_10(%arg0: i32) -> (i32, i32, i32) {
    %c0_i32 = arith.constant 0 : i32
    %c0_i32_0 = arith.constant 0 : i32
    %c0_i32_1 = arith.constant 0 : i32
    %c0_i32_2 = arith.constant 0 : i32
    return %c0_i32, %c0_i32_0, %c0_i32_1 : i32, i32, i32
  }
  func.func @transform_11(%arg0: i32) -> (i32, i32, i32) {
    %c0_i32 = arith.constant 0 : i32
    %c0_i32_0 = arith.constant 0 : i32
    %c0_i32_1 = arith.constant 0 : i32
    %c0_i32_2 = arith.constant 0 : i32
    return %c0_i32, %c0_i32_0, %c0_i32_1 : i32, i32, i32
  }
  func.func @transform_12(%arg0: i32) -> (i32, i32, i32) {
    %c0_i32 = arith.constant 0 : i32
    %c0_i32_0 = arith.constant 0 : i32
    %c0_i32_1 = arith.constant 0 : i32
    %c0_i32_2 = arith.constant 0 : i32
    return %c0_i32, %c0_i32_0, %c0_i32_1 : i32, i32, i32
  }
  func.func @transform_13(%arg0: i32) -> (i32, i32, i32) {
    %c0_i32 = arith.constant 0 : i32
    %c0_i32_0 = arith.constant 0 : i32
    %c0_i32_1 = arith.constant 0 : i32
    %c0_i32_2 = arith.constant 0 : i32
    return %c0_i32, %c0_i32_0, %c0_i32_1 : i32, i32, i32
  }
  func.func @transform_14(%arg0: i32) -> (i32, i32, i32) {
    %c0_i32 = arith.constant 0 : i32
    %c0_i32_0 = arith.constant 0 : i32
    %c0_i32_1 = arith.constant 0 : i32
    %c0_i32_2 = arith.constant 0 : i32
    return %c0_i32, %c0_i32_0, %c0_i32_1 : i32, i32, i32
  }
  func.func @transform_15(%arg0: i32) -> (i32, i32, i32) {
    %c0_i32 = arith.constant 0 : i32
    %c0_i32_0 = arith.constant 0 : i32
    %c0_i32_1 = arith.constant 0 : i32
    %c0_i32_2 = arith.constant 0 : i32
    return %c0_i32, %c0_i32_0, %c0_i32_1 : i32, i32, i32
  }
  func.func @transform_16(%arg0: i32) -> (i32, i32, i32) {
    %c0_i32 = arith.constant 0 : i32
    %c0_i32_0 = arith.constant 0 : i32
    %c0_i32_1 = arith.constant 0 : i32
    %c0_i32_2 = arith.constant 0 : i32
    return %c0_i32, %c0_i32_0, %c0_i32_1 : i32, i32, i32
  }
  func.func @transform_17(%arg0: i32) -> (i32, i32, i32) {
    %c0_i32 = arith.constant 0 : i32
    %c0_i32_0 = arith.constant 0 : i32
    %c0_i32_1 = arith.constant 0 : i32
    %c0_i32_2 = arith.constant 0 : i32
    return %c0_i32, %c0_i32_0, %c0_i32_1 : i32, i32, i32
  }
  func.func @transform_18(%arg0: i32) -> (i32, i32, i32) {
    %c0_i32 = arith.constant 0 : i32
    %c0_i32_0 = arith.constant 0 : i32
    %c0_i32_1 = arith.constant 0 : i32
    %c0_i32_2 = arith.constant 0 : i32
    return %c0_i32, %c0_i32_0, %c0_i32_1 : i32, i32, i32
  }
  func.func @transform_19(%arg0: i32) -> (i32, i32) {
    %c0_i32 = arith.constant 0 : i32
    %c0_i32_0 = arith.constant 0 : i32
    %c0_i32_1 = arith.constant 0 : i32
    return %c0_i32, %c0_i32_0 : i32, i32
  }
  func.func @transform_20(%arg0: i32) -> (i32, i32) {
    %c0_i32 = arith.constant 0 : i32
    %c0_i32_0 = arith.constant 0 : i32
    %c0_i32_1 = arith.constant 0 : i32
    return %c0_i32, %c0_i32_0 : i32, i32
  }
  func.func @transform_21(%arg0: i32) -> (i32, i32) {
    %c0_i32 = arith.constant 0 : i32
    %c0_i32_0 = arith.constant 0 : i32
    %c0_i32_1 = arith.constant 0 : i32
    return %c0_i32, %c0_i32_0 : i32, i32
  }
  func.func @transform_22(%arg0: i32) -> (i32, i32) {
    %c0_i32 = arith.constant 0 : i32
    %c0_i32_0 = arith.constant 0 : i32
    %c0_i32_1 = arith.constant 0 : i32
    return %c0_i32, %c0_i32_0 : i32, i32
  }
  func.func @transform_23(%arg0: i32) -> (i32, i32, i32) {
    %c0_i32 = arith.constant 0 : i32
    %c0_i32_0 = arith.constant 0 : i32
    %c0_i32_1 = arith.constant 0 : i32
    return %arg0, %c0_i32, %c0_i32_0 : i32, i32, i32
  }
}

</mosaic_0001>

<bundles_post_ra>
// kernel: dino_wrapper_forward.1
= control target key start
LH: loop header
LB: loop body
LE: loop exit
PB: predicated region body
PF: predicated region fallthrough
CT: control target
= control target key end

     0   :  { %s4875_s0 = inlined_call_operand.vmem [shape: bf16[4,4,640], index: 0, kind: input, shape index: {}]   ;;  %s4876_s1 = inlined_call_operand.vmem [shape: bf16[640,32], index: 1, kind: input, shape index: {}]   ;;  %s4877_s2 = inlined_call_operand.vmem [shape: f32[1,32], index: 2, kind: input, shape index: {}]   ;;  %s4878_s3 = inlined_call_operand.vmem [shape: f32[1,32], index: 3, kind: input, shape index: {}]   ;;  %s4879_s4 = inlined_call_operand.vmem [shape: f32[5,32], index: 4, kind: input, shape index: {}]   ;;  %s4880_s5 = inlined_call_operand.vmem [shape: f32[2,1,32], index: 5, kind: input, shape index: {}]   ;;  %s4881_s6 = inlined_call_operand.vmem [shape: f32[2,1,32], index: 6, kind: input, shape index: {}]   ;;  %s4882_s7 = inlined_call_operand.vmem [shape: bf16[2,32,96], index: 7, kind: input, shape index: {}]   ;;  %s4883_s8 = inlined_call_operand.vmem [shape: f32[2,1,96], index: 8, kind: input, shape index: {}]   ;;  %s4884_s9 = inlined_call_operand.vmem [shape: bf16[2,32,32], index: 9, kind: input, shape index: {}]   ;;  %s4885_s10 = inlined_call_operand.vmem [shape: f32[2,1,32], index: 10, kind: input, shape index: {}]   ;;  %s4886_s11 = inlined_call_operand.vmem [shape: f32[2,1,32], index: 11, kind: input, shape index: {}]   ;;  %s4887_s12 = inlined_call_operand.vmem [shape: f32[2,1,32], index: 12, kind: input, shape index: {}]   ;;  %s4888_s13 = inlined_call_operand.vmem [shape: f32[2,1,32], index: 13, kind: input, shape index: {}]   ;;  %s4889_s14 = inlined_call_operand.vmem [shape: bf16[2,32,128], index: 14, kind: input, shape index: {}]   ;;  %s4890_s15 = inlined_call_operand.vmem [shape: f32[2,1,128], index: 15, kind: input, shape index: {}]   ;;  %s4891_s16 = inlined_call_operand.vmem [shape: bf16[2,128,32], index: 16, kind: input, shape index: {}]   ;;  %s4892_s17 = inlined_call_operand.vmem [shape: f32[2,1,32], index: 17, kind: input, shape index: {}]   ;;  %s4893_s18 = inlined_call_operand.vmem [shape: f32[2,1,32], index: 18, kind: input, shape index: {}]   ;;  %s4894_s19 = inlined_call_operand.vmem [shape: f32[1,32], index: 19, kind: input, shape index: {}]   ;;  %s4895_s20 = inlined_call_operand.vmem [shape: f32[1,32], index: 20, kind: input, shape index: {}]   ;;  %s4896_s21 = inlined_call_operand.vmem [shape: bf16[32,128], index: 21, kind: input, shape index: {}]   ;;  %s4897_s22 = inlined_call_operand.vmem [shape: f32[1,128], index: 22, kind: input, shape index: {}]   ;;  %s4898_s23 = inlined_call_operand.hbm [shape: f32[2,2,128], index: 23, kind: output, shape index: {}]  }
   0x1   :  { %4923 = sst [smem:[#allocation11_spill]] %s4875_s0 }
   0x2   :  { %4924 = sst [smem:[#allocation12_spill]] %s4876_s1 }
   0x3   :  { %4925 = sst [smem:[#allocation13_spill]] %s4877_s2 }
   0x4   :  { %4926 = sst [smem:[#allocation14_spill]] %s4878_s3 }
   0x5   :  { %4927 = sst [smem:[#allocation15_spill]] %s4879_s4 }
   0x6   :  { %4928 = sst [smem:[#allocation16_spill]] %s4880_s5 }
   0x7   :  { %4929 = sst [smem:[#allocation17_spill]] %s4881_s6 }
   0x8   :  { %4930 = sst [smem:[#allocation18_spill]] %s4882_s7 }
   0x9   :  { %4931 = sst [smem:[#allocation19_spill]] %s4883_s8 }
   0xa   :  { %4932 = sst [smem:[#allocation20_spill]] %s4884_s9 }
   0xb   :  { %4933 = sst [smem:[#allocation21_spill]] %s4898_s23 }
   0xc   :  { %28 = vsyncpa [#allocation3], 0 }
   0xd   :  { %30 = vsyncpa [#allocation3 + $0x1], 0  ;;  %s4173_s4 = smov 0   ;;  %s4175_s30 = smov 0  }
   0xe   :  { %s4177_s24 = smov 0   ;;  %s4179_s25 = smov 0  }
   0xf LB: > { %4934 = sst [smem:[#allocation5_spill]] %s4028_s4  ;;  %s4194_s5 = sadd.s32 4294967295, %s4040_s25   ;;  %s4040_s25 = sphi %s4179_s25, %s4962_s25   ;;  %s4036_s24 = sphi %s4177_s24, %s4964_s24   ;;  %s4032_s30 = sphi %s4175_s30, %s4966_s30   ;;  %s4028_s4 = sphi %s4173_s4, %s4965_s4  }
  0x10   : > { %4935 = sst [smem:[#allocation6_spill]] %s4036_s24  ;;  %s3288_s1 = sadd.s32 4294967294, %s4040_s25  }
  0x11   : > { %4936 = sst [smem:[#allocation7_spill]] %s4040_s25  ;;  %s4198_s26 = sadd.s32 1, %s4040_s25  }
  0x12   : > { %4937 = sst [smem:[#allocation8_spill]] %s4198_s26  ;;  %s531_s2 = sadd.s32 1, %s4036_s24 }
  0x13   : > { %s528_s6 = ssub.s32 %s4040_s25, %s4198_s26  ;;  %p541_p0 = scmp.ne.s32.totalorder %s4036_s24, %s4032_s30 }
  0x14   : > { %p529_p1 = scmp.eq.s32.totalorder %s528_s6, 0  ;;  %p542_p2 = scmp.eq.s32.totalorder %s4194_s5, 1 }
  0x15   : > { %p547_p3 = scmp.ne.s32.totalorder %s4032_s30, %s4028_s4  ;;  %p548_p4 = scmp.eq.s32.totalorder %s3288_s1, 1 }
  0x16   : > { %s4209_s27 = scalar_select %p529_p1, %s4036_s24, %s531_s2  }
  0x17   : > { %p4211_p5 = por %p542_p2, %p541_p0  ;;  %p4215_p6 = por %p548_p4, %p547_p3 }
  0x18   : > { %4938 = sst [smem:[#allocation9_spill]] %s4209_s27  ;;  %p3291_p7 = scmp.ge.s32.totalorder %s4040_s25, 1 }
  0x19   : > { %s4940_s28 = scalar_select %p4215_p6, 1, 0 }
  0x1a   : > { %p642_p8 = scmp.lt.s32.totalorder %s4040_s25, 3 }
  0x1b   : > { %4941 = sst [smem:[#allocation10_spill]] %s4940_s28 }
  0x1c   : > { %p643_p9 = pnand %p3291_p7, %p642_p8 }
  0x1d   : > { %s4942_s0 = sld [smem:[#allocation12_spill]] (!%p643_p9)  ;;  %s3293_s28 = sshll.u32 (!%p643_p9), %s4194_s5, 1  ;;  %v726_v29 = vlaneseq (!%p643_p9)  ;;  %v4042_v34 = vmov (!%p643_p9), 1983009808   ;;  %v4043_v38 = vmov (!%p643_p9), 0.0   ;;  %vm773_vm0 = vcmask (!%p643_p9), 1041408  }
  0x1e   : > { %646 = sbr.rel (%p643_p9) target bundleno = 7718 (0x1e26), region = 112  ;;  %p708_p10 = scmp.lt.s32.totalorder (!%p643_p9), %s3293_s28, 3  ;;  %v724_v35 = vunpack.c.l.s4 (!%p643_p9), %v4042_v34  ;;  %vm4044_vm1 = vmmov (!%p643_p9), 0   ;;  %vm1262_vm2 = vcmask (!%p643_p9), 1040384   ;;  %vm1264_vm3 = vcmask (!%p643_p9), 1044480  }
  0x1f   : > { %s4943_s23 = sld [smem:[#allocation11_spill]] (!%p643_p9)  ;;  %v4322_v36 = vshrl.u32 (!%p643_p9), %v726_v29, 7  ;;  %s4944_s26 = sld [smem:[#allocation13_spill]] (!%p643_p9)  ;;  %vm1266_vm4 = vcmask (!%p643_p9), 1045504   ;;  %vm1270_vm5 = vcmask (!%p643_p9), 261120   ;;  %vm1274_vm6 = vcmask (!%p643_p9), 254976  }
  0x20   : > { %v725_v39 = vunpack.c.0.s8 (!%p643_p9), %v724_v35  ;;  %s4946_s29 = sld [smem:[#allocation14_spill]] (!%p643_p9)  ;;  %s4947_s24 = sld [smem:[#allocation18_spill]] (!%p643_p9)  ;;  %vm1387_vm7 = vcmask (!%p643_p9), 130048   ;;  %vm1434_vm8 = vcmask (!%p643_p9), 36864   ;;  %vm1453_vm9 = vcmask (!%p643_p9), 1042432  }
  0x21   : > { %s4950_s6 = sld [smem:[#allocation17_spill]] (!%p643_p9)  ;;  %s4951_s8 = sld [smem:[#allocation19_spill]] (!%p643_p9)  ;;  %vm1449_vm10 = vcmask (!%p643_p9), 39936  }
  0x22   : > { %v728_v42 = vsub.s32 (!%p643_p9), %v725_v39, %v4322_v36  ;;  %s4919_s4 = smov (!%p643_p9), 80   ;;  %s4917_s2 = smov (!%p643_p9), 112  }
  0x23   : > { %v3843_v0 = vld [vmem:[%s4942_s0 + $0x40] sm:$0xff] (!%p643_p9)   ;;  %v3847_v4 = vld [vmem:[%s4942_s0 + $0x48] sm:$0xff] (!%p643_p9)   ;;  %v3851_v8 = vld [vmem:[%s4942_s0 + $0x50] sm:$0xff] (!%p643_p9)   ;;  %s4911_s3 = smov (!%p643_p9), 48   ;;  %s4952_s9 = sld [smem:[#allocation20_spill]] (!%p643_p9) }
  0x24   : > { %v3844_v1 = vld [vmem:[%s4942_s0] sm:$0xff] (!%p643_p9)   ;;  %3457 = vmatprep.subr.bf16.mxu0 (!%p643_p9), %v3843_v0  ;;  %v3848_v5 = vld [vmem:[%s4942_s0 + $0x8] sm:$0xff] (!%p643_p9)   ;;  %v3852_v9 = vld [vmem:[%s4942_s0 + $0x10] sm:$0xff] (!%p643_p9)   ;;  %s4953_s27 = smov (!%p643_p9), 80  }
  0x25   : > { %v3845_v2 = vld [vmem:[%s4942_s0 + $0xc0] sm:$0xff]   ;;  %3458 = vmatpush3.bf16.msra.mxu0 %v3844_v1  ;;  %v3849_v6 = vld [vmem:[%s4942_s0 + $0xc8] sm:$0xff]   ;;  %v3853_v10 = vld [vmem:[%s4942_s0 + $0xd0] sm:$0xff]   ;;  %s4968_s28 = smov (!%p708_p10, %s3293_s28), 3 }
  0x26   : > { %v3846_v3 = vld [vmem:[%s4942_s0 + $0x80] sm:$0xff]   ;;  %3479 = vmatprep.subr.bf16.mxu1 %v3845_v2  ;;  %3459 = vmatprep.subr.bf16.mxu0 %v3847_v4  ;;  %v3850_v7 = vld [vmem:[%s4942_s0 + $0x88] sm:$0xff]   ;;  %v3854_v11 = vld [vmem:[%s4942_s0 + $0x90] sm:$0xff]   ;;  %s3793_s1 = smul.u32 10, %s4968_s28  ;;  %s3454_s28 = sshll.u32 %s4194_s5, 5 }
  0x27   : > { %3480 = vmatpush3.bf16.msra.mxu1 %v3846_v3  ;;  %v3855_v12 = vld [vmem:[%s4942_s0 + $0x58] sm:$0xff]   ;;  %v3859_v16 = vld [vmem:[%s4942_s0 + $0x60] sm:$0xff]   ;;  %v3863_v20 = vld [vmem:[%s4942_s0 + $0x68] sm:$0xff]   ;;  %s4052_s5 = smov [#allocation2]  }
  0x28   : > { %3481 = vmatprep.subr.bf16.mxu1 %v3849_v6  ;;  %v3856_v13 = vld [vmem:[%s4942_s0 + $0x18] sm:$0xff]   ;;  %v3860_v17 = vld [vmem:[%s4942_s0 + $0x20] sm:$0xff]   ;;  %v3864_v21 = vld [vmem:[%s4942_s0 + $0x28] sm:$0xff]   ;;  %s4312_s25 = scalar_lea.vmem %s4943_s23, %s3793_s1  ;;  %s4945_s23 = sld [smem:[#allocation15_spill]] }
  0x29   : > { %3460 = vmatpush3.bf16.msra.mxu0 %v3848_v5  ;;  %v3857_v14 = vld [vmem:[%s4942_s0 + $0xd8] sm:$0xff]   ;;  %v3861_v18 = vld [vmem:[%s4942_s0 + $0xe0] sm:$0xff]   ;;  %v3865_v22 = vld [vmem:[%s4942_s0 + $0xe8] sm:$0xff]   ;;  %s4913_s1 = smov 64  }
  0x2a   : > { %3461 = vmatprep.subr.bf16.mxu0 %v3851_v8  ;;  %v3858_v15 = vld [vmem:[%s4942_s0 + $0x98] sm:$0xff]   ;;  %v3862_v19 = vld [vmem:[%s4942_s0 + $0xa0] sm:$0xff]   ;;  %v3866_v23 = vld [vmem:[%s4942_s0 + $0xa8] sm:$0xff]  }
  0x2b   : > { %3482 = vmatpush3.bf16.msra.mxu1 %v3850_v7  ;;  %v3867_v24 = vld [vmem:[%s4942_s0 + $0x70] sm:$0xff]   ;;  %v3871_v28 = vld [vmem:[%s4942_s0 + $0x78] sm:$0xff]   ;;  %v715_v32 = vld [vmem:[%s4312_s25] sm:$0xff] }
  0x2c   : > { %3483 = vmatprep.subr.bf16.mxu1 %v3853_v10  ;;  %v3868_v25 = vld [vmem:[%s4942_s0 + $0x30] sm:$0xff]   ;;  %v3872_v30 = vld [vmem:[%s4942_s0 + $0x38] sm:$0xff]   ;;  %v722_v41 = vcombine.high %v715_v32, %v715_v32  ;;  %v729_v43 = vrot.slane %v715_v32, %v728_v42  ;;  %v3877_v52 = vld [vmem:[%s4942_s0 + $0x100] sm:$0xff]  }
  0x2d   : > { %3462 = vmatpush3.bf16.msra.mxu0 %v3852_v9  ;;  %v3869_v26 = vld [vmem:[%s4942_s0 + $0xf0] sm:$0xff]   ;;  %v3873_v31 = vld [vmem:[%s4942_s0 + $0xf8] sm:$0xff]   ;;  %v3878_v56 = vld [vmem:[%s4942_s0 + $0x108] sm:$0xff]  }
  0x2e   : > { %3463 = vmatprep.subr.bf16.mxu0 %v3855_v12  ;;  %v3870_v27 = vld [vmem:[%s4942_s0 + $0xb0] sm:$0xff]   ;;  %v3875_v37 = vld [vmem:[%s4942_s0 + $0xb8] sm:$0xff]   ;;  %v736_v45 = vrot.slane %v722_v41, %v728_v42  ;;  %v737_v47 = vcombine.high %v729_v43, %v729_v43  ;;  %v3881_v59 = vld [vmem:[%s4942_s0 + $0x120] sm:$0xff]  }
  0x2f   : > { %3484 = vmatpush3.bf16.msra.mxu1 %v3854_v11  ;;  %v3295_v33 = vld [vmem:[%s4312_s25 + $0xa] sm:$0xff]  ;;  %v3880_v58 = vld [vmem:[%s4942_s0 + $0x118] sm:$0xff]   ;;  %v3885_v62 = vld [vmem:[%s4312_s25 + $0x12] ss:$0 sps:$4 sm:$0x33]  }
  0x30   : > { %3485 = vmatprep.subr.bf16.mxu1 %v3857_v14  ;;  %v748_v40 = vcombine.low %v3295_v33, %v3295_v33  ;;  %v762_v46 = vrot.slane %v3295_v33, %v728_v42  ;;  %v738_v49 = vcombine.high %v736_v45, %v736_v45  ;;  %v3879_v57 = vld [vmem:[%s4942_s0 + $0x110] sm:$0xff]   ;;  %v3882_v60 = vld [vmem:[%s4942_s0 + $0x128] sm:$0xff]   ;;  %v3884_v63 = vld [vmem:[%s4942_s0 + $0x138] sm:$0xff]   ;;  %v772_v0 = vrot.slane %v3885_v62, %v728_v42 }
  0x31   : > { %3464 = vmatpush3.bf16.msra.mxu0 %v3856_v13  ;;  %v3883_v61 = vld [vmem:[%s4942_s0 + $0x130] sm:$0xff]   ;;  %v3297_v1 = vld.sshfl [vmem:[%s4312_s25 + $0x8] sm:$0x3 pattern:$0x76325410]  ;;  %s4045_s25 = smov 96  }
  0x32   : > { %3465 = vmatprep.subr.bf16.mxu0 %v3859_v16  ;;  %v755_v44 = vrot.slane %v748_v40, %v728_v42  ;;  %v764_v51 = vcombine.high %v762_v46, %v762_v46  ;;  %v784_v54 = vsel %vm773_vm0, %v736_v45, %v762_v46  ;;  %v792_v2 = vsel %vm773_vm0, %v3297_v1, %v772_v0  ;;  %v3298_v4 = vld [vmem:[%s4944_s26] ss:$0 sm:$0xff]  ;;  %v1244_v16 = vld [vmem:[%s4945_s23 + $0x1] sm:$0xf]  ;;  %s4948_s26 = smov %s4947_s24 }
  0x33   : > { %3486 = vmatpush3.bf16.msra.mxu1 %v3858_v15  ;;  %v3340_v62 = vld [vmem:[%s4950_s6] ss:$0 sm:$0xff] }
  0x34   : > { %3487 = vmatprep.subr.bf16.mxu1 %v3861_v18  ;;  %v763_v48 = vcombine.high %v755_v44, %v755_v44  ;;  %v776_v50 = vsel %vm773_vm0, %v729_v43, %v755_v44  ;;  %v788_v55 = vsel %vm773_vm0, %v738_v49, %v764_v51  ;;  %v1242_v18 = vld [vmem:[%s4945_s23] sm:$0x1]  ;;  %v3887_v49 = vld [vmem:[%s4948_s26 + $0x8] sm:$0xff]  }
  0x35   : > { %3466 = vmatpush3.bf16.msra.mxu0 %v3860_v17  ;;  %1193 = vmatprep.mubr.bf16.mxu1 %v788_v55  ;;  %v1241_v17 = vld [vmem:[%s4946_s29] sm:$0x1]  ;;  %s4949_s29 = sld [smem:[#allocation16_spill]] }
  0x36   : > { %3467 = vmatprep.subr.bf16.mxu0 %v3863_v20  ;;  %v780_v53 = vsel %vm773_vm0, %v737_v47, %v763_v48  ;;  %v3886_v48 = vld [vmem:[%s4947_s24] sm:$0xff]   ;;  %s4954_s24 = smov 112  }
  0x37   : > { %3488 = vmatpush3.bf16.msra.mxu1 %v3862_v19  ;;  %1153 = vmatprep.mubr.bf16.mxu0 %v780_v53  ;;  %v1247_v19 = vrot.slane %v1244_v16, 4 }
  0x38   : > { %3489 = vmatprep.subr.bf16.mxu1 %v3865_v22  ;;  %v1256_v22 = vsub.s32 0, %v4322_v36 }
  0x39   : > { %3468 = vmatpush3.bf16.msra.mxu0 %v3864_v21  ;;  %v1243_v21 = vadd.f32 %v1242_v18, %v1241_v17 }
  0x3a   : > { %3469 = vmatprep.subr.bf16.mxu0 %v3867_v24 }
  0x3b   : > { %3490 = vmatpush3.bf16.msra.mxu1 %v3866_v23  ;;  %v1257_v29 = vrot.slane %v1243_v21, %v1256_v22 }
  0x3c   : > { %3491 = vmatprep.subr.bf16.mxu1 %v3869_v26 }
  0x3d   : > { %3470 = vmatpush3.bf16.msra.mxu0 %v3868_v25 }
  0x3e   : > { %3471 = vmatprep.subr.bf16.mxu0 %v3871_v28 }
  0x3f   : > { %3492 = vmatpush3.bf16.msra.mxu1 %v3870_v27 }
  0x40   : > { %3493 = vmatprep.subr.bf16.mxu1 %v3873_v31 }
  0x41   : > { %3472 = vmatpush3.bf16.msra.mxu0 %v3872_v30 }
  0x42   : > { %3581 = vmatprep.subr.bf16.mxu0 %v4043_v38 }
  0x43   : > { %3494 = vmatpush3.bf16.msra.mxu1 %v3875_v37 }
  0x44   : > { %3601 = vmatprep.subr.bf16.mxu1 %v4043_v38  ;;  %1154 = vmatmul.mubr.bf16.vlgmr.msra.gmra.mrb[0].mxu0 %v776_v50 }
  0x45   : > { %3582 = vmatpush3.bf16.msra.mxu0 %v3877_v52  ;;  %3597 = vmatprep.mubr.msk.bf16.mxu0 %vm4044_vm1, %v4043_v38 }
  0x46   : > { %1194 = vmatmul.mubr.bf16.vlgmr.msra.gmra.mrb[0].mxu1 %v784_v54  ;;  %3583 = vmatprep.subr.bf16.mxu0 %v4043_v38 }
  0x47   : > { %3605 = vmatprep.mubr.msk.bf16.mxu1 %vm4044_vm1, %v4043_v38  ;;  %3602 = vmatpush3.bf16.msra.mxu1 %v3886_v48 }
  0x48   : > { %3603 = vmatprep.subr.bf16.mxu1 %v4043_v38 }
  0x49   : > { %3584 = vmatpush3.bf16.msra.mxu0 %v3878_v56 }
  0x4a   : > { %3585 = vmatprep.subr.bf16.mxu0 %v4043_v38 }
  0x4b   : > { %3604 = vmatpush3.bf16.msra.mxu1 %v3887_v49 }
  0x4c   : > { %3609 = vmatprep.subr.bf16.mxu1 %v4043_v38 }
  0x4d   : > { %3586 = vmatpush3.bf16.msra.mxu0 %v3879_v57 }
  0x4e   : > { %3587 = vmatprep.subr.bf16.mxu0 %v4043_v38 }
  0x51   : > { %3588 = vmatpush3.bf16.msra.mxu0 %v3880_v58  ;;  %v3339_v58 = vld [vmem:[%s4949_s29] ss:$0 sm:$0xff] }
  0x52   : > { %3589 = vmatprep.subr.bf16.mxu0 %v4043_v38 }
  0x55   : > { %3590 = vmatpush3.bf16.msra.mxu0 %v3881_v59 }
  0x56   : > { %3591 = vmatprep.subr.bf16.mxu0 %v4043_v38 }
  0x59   : > { %3592 = vmatpush3.bf16.msra.mxu0 %v3882_v60 }
  0x5a   : > { %3593 = vmatprep.subr.bf16.mxu0 %v4043_v38 }
  0x5d   : > { %3594 = vmatpush3.bf16.msra.mxu0 %v3883_v61 }
  0x5e   : > { %3595 = vmatprep.subr.bf16.mxu0 %v4043_v38 }
  0x61   : > { %3596 = vmatpush3.bf16.msra.mxu0 %v3884_v63 }
  0x62   : > { %3639 = vmatprep.subr.bf16.mxu0 %v4043_v38 }
  0x64   : > { %3598 = vmatmul.mubr.bf16.vlgmr.msra.gmra.mrb[4].mxu0 %v792_v2 }
  0x65   : > { %3641 = vmatprep.mubr.msk.bf16.mxu0 %vm4044_vm1, %v4043_v38 }
 0x117   : > { %v3473_v3 = vpop.f32.mrb[0].mxu0 }
 0x118   : > { %v3474_v5 = vpop.f32.mrb[1].mxu0 }
 0x119   : > { %v3495_v6 = vpop.f32.mrb[0].mxu1  ;;  %v3475_v7 = vadd.f32 %v3474_v5, %v3473_v3  ;;  %v3476_v8 = vpop.f32.mrb[2].mxu0  ;;  %v3341_v3 = vld [vmem:[%s4951_s8] ss:$0 sm:$0xff] }
 0x11a   : > { %v3496_v9 = vpop.f32.mrb[1].mxu1  ;;  %v3477_v10 = vpop.f32.mrb[3].mxu0 }
 0x11b   : > { %v3497_v11 = vadd.f32 %v3496_v9, %v3495_v6  ;;  %v3498_v12 = vpop.f32.mrb[2].mxu1  ;;  %v1156_v13 = vadd.f32 %v3475_v7, %v3298_v4 }
 0x11c   : > { %v3499_v14 = vpop.f32.mrb[3].mxu1 }
 0x11d   : > { %v1196_v15 = vadd.f32 %v3497_v11, %v1156_v13 }
 0x137   : > { %v1235_v20 = vpop.f32.mrb[4].mxu0 }
 0x138   : > { %v1236_v23 = vadd.f32 %v1235_v20, %v1196_v15  ;;  %v3599_v24 = vpop.f32.mrb[5].mxu0 }
 0x139   : > { %v1238_v25 = vpop.f32.mrb[6].mxu0  ;;  %v4049_v24 = vmov 65535  }
 0x13a   : > { %v1245_v26 = vadd.f32 %v1244_v16, %v1236_v23  ;;  %v1249_v27 = vadd.f32 %v1247_v19, %v1236_v23  ;;  %v3600_v28 = vpop.f32.mrb[7].mxu0  ;;  %v1454_v25 = vsel %vm773_vm0, 4294967295, %v4049_v24 }
 0x13c   : > { %v1251_v30 = vrot.slane %v1245_v26, 7  ;;  %v4388_v31 = vrot.slane %v1249_v27, 6  ;;  %v4444_v27 = vsel %vm1453_vm9, %v1454_v25, 0 }
 0x13e   : > { %v1263_v32 = vsel %vm1262_vm2, %v1243_v21, %v1251_v30  ;;  %v1275_v36 = vsel %vm1274_vm6, %v4388_v31, 0.0 }
 0x13f   : > { %v1265_v33 = vsel %vm1264_vm3, %v1263_v32, %v1257_v29 }
 0x140   : > { %v4393_v34 = vsel %vm1266_vm4, %v1265_v33, %v4388_v31 }
 0x141   : > { %v1271_v35 = vsel %vm1270_vm5, %v4393_v34, 0.0 }
 0x142   : > { %1272 = vadd.xlane.f32.xlu0 %v1271_v35 }
 0x146   : > { %1276 = vadd.xlane.f32.xlu0 %v1275_v36 }
 0x1cf   : > { %v1273_v37 = vpop.xlane.xlu0 %1272 }
 0x1d0   : > { %v1279_v39 = vmul.f32 0.03125, %v1273_v37 }
 0x1d2   : > { %v1281_v40 = vsub.f32 %v4393_v34, %v1279_v39 }
 0x1d3   : > { %v1277_v41 = vpop.xlane.xlu0 %1276 }
 0x1d4   : > { %v1280_v42 = vmul.f32 0.03125, %v1277_v41  ;;  %v1283_v43 = vmul.f32 %v1281_v40, %v1281_v40 }
 0x1d6   : > { %v1282_v44 = vsub.f32 %v4388_v31, %v1280_v42  ;;  %v1285_v45 = vsel %vm1270_vm5, %v1283_v43, 0.0 }
 0x1d7   : > { %1286 = vadd.xlane.f32.xlu1 %v1285_v45 }
 0x1d8   : > { %v1284_v46 = vmul.f32 %v1282_v44, %v1282_v44 }
 0x1da   : > { %v1288_v47 = vsel %vm1274_vm6, %v1284_v46, 0.0 }
 0x1db   : > { %1289 = vadd.xlane.f32.xlu1 %v1288_v47 }
 0x264   : > { %v1287_v50 = vpop.xlane.xlu1 %1286 }
 0x265   : > { %v1291_v51 = vmul.f32 0.03125, %v1287_v50 }
 0x267   : > { %v1293_v52 = vadd.f32 1e-06, %v1291_v51 }
 0x268   : > { %v1290_v53 = vpop.xlane.xlu1 %1289 }
 0x269   : > { %3916 = vrsqrt.f32 %v1293_v52  ;;  %v1292_v54 = vmul.f32 0.03125, %v1290_v53 }
 0x26b   : > { %v1294_v55 = vadd.f32 1e-06, %v1292_v54 }
 0x26d   : > { %3918 = vrsqrt.f32 %v1294_v55 }
 0x273   : > { %v3917_v56 = vpop.eup %3916 }
 0x274   : > { %v1297_v57 = vmul.f32 %v3917_v56, %v1281_v40 }
 0x276   : > { %v1305_v60 = vmul.f32 %v3339_v58, %v1297_v57 }
 0x277   : > { %v3919_v59 = vpop.eup %3918 }
 0x278   : > { %v1298_v61 = vmul.f32 %v3919_v59, %v1282_v44  ;;  %v1313_v0 = vadd.f32 %v3340_v62, %v1305_v60 }
 0x27a   : > { %v1306_v63 = vmul.f32 %v3339_v58, %v1298_v61 }
 0x27c   : > { %v1314_v1 = vadd.f32 %v3340_v62, %v1306_v63 }
 0x27e   : > { %v1315_v2 = vpack.c.bf16 %v1314_v1, %v1313_v0 }
 0x280   : > { %3606 = vmatmul.mubr.msk.bf16.vlgmr.msra.gmra.mrb[4].mxu1 %vm1270_vm5, %v1315_v2 }
 0x281   : > { %3611 = vmatprep.mubr.msk.bf16.mxu1 %vm4044_vm1, %v4043_v38 }
 0x353   : > { %v1376_v4 = vpop.f32.mrb[4].mxu1 }
 0x354   : > { %v1377_v5 = vadd.f32 %v3341_v3, %v1376_v4  ;;  %v3607_v6 = vpop.f32.mrb[5].mxu1 }
 0x355   : > { %v1379_v7 = vpop.f32.mrb[6].mxu1 }
 0x356   : > { %v4423_v8 = vpack.c.bf16 %v1377_v5, %v1377_v5  ;;  %v1380_v9 = vadd.f32 %v3341_v3, %v1379_v7  ;;  %v3608_v10 = vpop.f32.mrb[7].mxu1 }
 0x358   : > { %v4425_v11 = vpack.c.bf16 %v1380_v9, %v1377_v5  ;;  %1385 = vrot.lane.b32.xlu0 %v4423_v8, %s4045_s25 }
 0x35a   : > { %v1616_v48 = vshrl.u32 %v4425_v11, 16  ;;  %v1619_v49 = vshll.u32 %v4425_v11, 16 }
 0x35c   : > { %1501 = vrot.lane.b32.xlu0 %v4423_v8, %s4919_s4  ;;  %v1618_v50 = vrot.slane %v1616_v48, 2  ;;  %v1621_v51 = vrot.slane %v1619_v49, 3  ;;  %v3889_v48 = vld [vmem:[%s4952_s9 + $0x8] sm:$0xff]  }
 0x35e   : > { %v4463_v52 = vor.u32 %v1621_v51, %v1618_v50 }
 0x3ca   : > { %v1386_v12 = vpop.permute.xlu0 %1385 }
 0x3cb   : > { %v1392_v13 = vsel %vm1387_vm7, %v1386_v12, 0 }
 0x3cc   : > { %3610 = vmatpush3.bf16.xpose.msra.mxu1 %v1392_v13 }
 0x3cd   : > { %3615 = vmatprep.subr.bf16.mxu1 %v4043_v38 }
 0x3ce   : > { %v1502_v33 = vpop.permute.xlu0 %1501 }
 0x3cf   : > { %v1507_v36 = vsel %vm1387_vm7, %v1502_v33, 0 }
 0x3d3   : > { %3612 = vmatmul.mubr.msk.bf16.vlgmr.msra.gmra.mrb[8].mxu1 %vm1387_vm7, %v4423_v8 }
 0x3d4   : > { %3617 = vmatprep.mubr.msk.bf16.mxu1 %vm4044_vm1, %v4043_v38 }
 0x4a6   : > { %v1428_v14 = vpop.f32.mrb[8].mxu1 }
 0x4a7   : > { %v3613_v15 = vpop.f32.mrb[9].mxu1  ;;  %v1435_v16 = vsel %vm1434_vm8, %v1428_v14, -inf }
 0x4a8   : > { %1436 = vmax.xlane.f32.xlu1 %v1435_v16  ;;  %v1431_v17 = vpop.f32.mrb[10].mxu1 }
 0x4a9   : > { %v3614_v18 = vpop.f32.mrb[11].mxu1 }
 0x535   : > { %v1437_v19 = vpop.xlane.xlu1 %1436 }
 0x536   : > { %v1438_v20 = vsub.f32 %v1428_v14, %v1437_v19 }
 0x538   : > { %v1439_v21 = vmul.f32 1.442695, %v1438_v20 }
 0x53a   : > { %3920 = vpow2.f32 %v1439_v21 }
 0x544   : > { %v3921_v22 = vpop.eup %3920 }
 0x545   : > { %v1441_v23 = vsel %vm1434_vm8, %v3921_v22, 0.0 }
 0x546   : > { %1442 = vadd.xlane.f32.xlu1 %v1441_v23 }
 0x557   : > { %1447 = vrot.lane.b32.xlu1 %v4423_v8, %s4913_s1 }
 0x55b   : > { %1499 = vrot.lane.b32.xlu1 %v4423_v8, %s4917_s2 }
 0x5d3   : > { %v1443_v26 = vpop.xlane.xlu1 %1442 }
 0x5d4   : > { %3922 = vrcp.f32 %v1443_v26 }
 0x5d7   : > { %v1448_v28 = vpop.permute.xlu1 %1447 }
 0x5d8   : > { %v1457_v29 = vand.u32 %v4444_v27, %v1448_v28 }
 0x5da   : > { %3616 = vmatpush3.bf16.msra.mxu1 %v1457_v29 }
 0x5db   : > { %3621 = vmatprep.subr.bf16.mxu1 %v4043_v38  ;;  %v1500_v37 = vpop.permute.xlu1 %1499 }
 0x5de   : > { %v3923_v30 = vpop.eup %3922 }
 0x5df   : > { %v1445_v32 = vmul.f32 %v3923_v30, %v3921_v22 }
 0x5e1   : > { %v1446_v35 = vpack.c.bf16 %v1445_v32, %v1445_v32 }
 0x5e3   : > { %3618 = vmatmul.mubr.msk.bf16.vlgmr.msra.gmra.mrb[12].mxu1 %vm1449_vm10, %v1446_v35 }
 0x5e4   : > { %3622 = vmatpush3.bf16.xpose.msra.mxu1 %v1507_v36  ;;  %3623 = vmatprep.mubr.msk.bf16.mxu1 %vm4044_vm1, %v4043_v38 }
 0x5e5   : > { %3627 = vmatprep.subr.bf16.mxu1 %v4043_v38 }
 0x5eb   : > { %3624 = vmatmul.mubr.msk.bf16.vlgmr.msra.gmra.mrb[16].mxu1 %vm1387_vm7, %v1500_v37 }
 0x5ec   : > { %3629 = vmatprep.mubr.msk.bf16.mxu1 %vm4044_vm1, %v4043_v38 }
 0x6b6   : > { %v4456_v39 = vpop.f32.mrb[12].mxu1 }
 0x6b7   : > { %v3619_v40 = vpop.f32.mrb[13].mxu1 }
 0x6b8   : > { %v1496_v41 = vpop.f32.mrb[14].mxu1 }
 0x6b9   : > { %v3620_v42 = vpop.f32.mrb[15].mxu1 }
 0x6be   : > { %v1543_v43 = vpop.f32.mrb[16].mxu1 }
 0x6bf   : > { %v3625_v44 = vpop.f32.mrb[17].mxu1  ;;  %v1549_v45 = vsel %vm1434_vm8, %v1543_v43, -inf }
 0x6c0   : > { %1550 = vmax.xlane.f32.xlu0 %v1549_v45  ;;  %v1546_v46 = vpop.f32.mrb[18].mxu1 }
 0x6c1   : > { %v3626_v47 = vpop.f32.mrb[19].mxu1  ;;  %v3888_v46 = vld [vmem:[%s4952_s9] sm:$0xff]  }
 0x6d6   : > { %1561 = vrot.lane.b32.xlu0 %v4423_v8, %s4911_s3 }
 0x6da   : > { %1733 = vrot.lane.b32.xlu0 %v4463_v52, %s4919_s4  ;;  %s4956_s4 = smov 48  }
 0x74d   : > { %v1551_v53 = vpop.xlane.xlu0 %1550 }
 0x74e   : > { %v1552_v54 = vsub.f32 %v1543_v43, %v1551_v53 }
 0x750   : > { %v1553_v55 = vmul.f32 1.442695, %v1552_v54 }
 0x751   : > { %v1562_v56 = vpop.permute.xlu0 %1561 }
 0x752   : > { %3924 = vpow2.f32 %v1553_v55  ;;  %v1567_v57 = vand.u32 %v1562_v56, %v4444_v27 }
 0x754   : > { %3628 = vmatpush3.bf16.msra.mxu1 %v1567_v57 }
 0x755   : > { %3633 = vmatprep.subr.bf16.mxu1 %v4043_v38  ;;  %v1734_v2 = vpop.permute.xlu0 %1733 }
 0x756   : > { %v1739_v3 = vsel %vm1387_vm7, %v1734_v2, 0 }
 0x75c   : > { %v3925_v58 = vpop.eup %3924 }
 0x75d   : > { %v1555_v59 = vsel %vm1434_vm8, %v3925_v58, 0.0 }
 0x75e   : > { %1556 = vadd.xlane.f32.xlu1 %v1555_v59 }
 0x76f   : > { %1623 = vrot.lane.b32.xlu1 %v4463_v52, %s4045_s25 }
 0x773   : > { %1731 = vrot.lane.b32.xlu1 %v4463_v52, %s4917_s2  ;;  %s704_s2 = sand.u32 1, %s4032_s30  }
 0x7eb   : > { %v1557_v60 = vpop.xlane.xlu1 %1556 }
 0x7ec   : > { %3926 = vrcp.f32 %v1557_v60 }
 0x7ef   : > { %v1624_v63 = vpop.permute.xlu1 %1623 }
 0x7f0   : > { %v1629_v1 = vsel %vm1387_vm7, %v1624_v63, 0  ;;  %v3353_v63 = vld [vmem:[%s4885_s10] ss:$0 sm:$0xff] }
 0x7f3   : > { %v1732_v4 = vpop.permute.xlu1 %1731 }
 0x7f6   : > { %v3927_v61 = vpop.eup %3926 }
 0x7f7   : > { %v1559_v62 = vmul.f32 %v3927_v61, %v3925_v58 }
 0x7f9   : > { %v1560_v0 = vpack.c.bf16 %v1559_v62, %v1559_v62 }
 0x7fb   : > { %3630 = vmatmul.mubr.msk.bf16.vlgmr.msra.gmra.mrb[20].mxu1 %vm1449_vm10, %v1560_v0 }
 0x7fc   : > { %3634 = vmatpush3.bf16.xpose.msra.mxu1 %v1629_v1  ;;  %3635 = vmatprep.mubr.msk.bf16.mxu1 %vm4044_vm1, %v4043_v38  ;;  %v3357_v1 = vld [vmem:[%s4886_s11] ss:$0 sm:$0xff] }
 0x7fd   : > { %3645 = vmatprep.subr.bf16.mxu1 %v4043_v38 }
 0x803   : > { %3636 = vmatmul.mubr.msk.bf16.vlgmr.msra.gmra.mrb[24].mxu1 %vm1387_vm7, %v4463_v52 }
 0x804   : > { %3646 = vmatpush3.bf16.xpose.msra.mxu1 %v1739_v3  ;;  %3647 = vmatprep.mubr.msk.bf16.mxu1 %vm4044_vm1, %v4043_v38 }
 0x805   : > { %3657 = vmatprep.subr.bf16.mxu1 %v4043_v38 }
 0x80b   : > { %3648 = vmatmul.mubr.msk.bf16.vlgmr.msra.gmra.mrb[28].mxu1 %vm1387_vm7, %v1732_v4 }
 0x80c   : > { %3661 = vmatprep.mubr.msk.bf16.mxu1 %vm4044_vm1, %v4043_v38  ;;  %3658 = vmatpush3.bf16.msra.mxu1 %v3888_v46  ;;  %v3894_v46 = vld [vmem:[%s4891_s16 + $0x10] sm:$0xff]  }
 0x80d   : > { %3659 = vmatprep.subr.bf16.mxu1 %v4043_v38 }
 0x810   : > { %3660 = vmatpush3.bf16.msra.mxu1 %v3889_v48  ;;  %v3896_v48 = vld [vmem:[%s4891_s16 + $0x20] sm:$0xff]  }
 0x811   : > { %3673 = vmatprep.subr.bf16.mxu1 %v4043_v38 }
 0x8ce   : > { %v4488_v5 = vpop.f32.mrb[20].mxu1 }
 0x8cf   : > { %v3631_v6 = vpop.f32.mrb[21].mxu1 }
 0x8d0   : > { %v1606_v7 = vpop.f32.mrb[22].mxu1 }
 0x8d1   : > { %v3632_v8 = vpop.f32.mrb[23].mxu1 }
 0x8d6   : > { %v1665_v9 = vpop.f32.mrb[24].mxu1 }
 0x8d7   : > { %v3637_v10 = vpop.f32.mrb[25].mxu1  ;;  %v1671_v11 = vsel %vm1434_vm8, %v1665_v9, -inf }
 0x8d8   : > { %1672 = vmax.xlane.f32.xlu0 %v1671_v11  ;;  %v1668_v12 = vpop.f32.mrb[26].mxu1 }
 0x8d9   : > { %v3638_v13 = vpop.f32.mrb[27].mxu1 }
 0x8de   : > { %v1775_v14 = vpop.f32.mrb[28].mxu1 }
 0x8df   : > { %v3649_v15 = vpop.f32.mrb[29].mxu1  ;;  %v1781_v16 = vsel %vm1434_vm8, %v1775_v14, -inf }
 0x8e0   : > { %1782 = vmax.xlane.f32.xlu1 %v1781_v16  ;;  %v1778_v17 = vpop.f32.mrb[30].mxu1 }
 0x8e1   : > { %v3650_v18 = vpop.f32.mrb[31].mxu1 }
 0x8f1   : > { %1793 = vrot.lane.b32.xlu1 %v4463_v52, %s4911_s3  ;;  %s3292_s3 = sshll.u32 %s704_s2, 1 }
 0x965   : > { %v1673_v19 = vpop.xlane.xlu0 %1672 }
 0x966   : > { %v1674_v20 = vsub.f32 %v1665_v9, %v1673_v19 }
 0x968   : > { %v1675_v21 = vmul.f32 1.442695, %v1674_v20  ;;  %v3890_v20 = vld [vmem:[%s4889_s14] sm:$0xff]  }
 0x96a   : > { %3928 = vpow2.f32 %v1675_v21  ;;  %v3891_v21 = vld [vmem:[%s4889_s14 + $0x8] sm:$0xff]  }
 0x96d   : > { %v1783_v22 = vpop.xlane.xlu1 %1782 }
 0x96e   : > { %v1784_v23 = vsub.f32 %v1775_v14, %v1783_v22 }
 0x970   : > { %v1785_v24 = vmul.f32 1.442695, %v1784_v23 }
 0x971   : > { %v1794_v40 = vpop.permute.xlu1 %1793 }
 0x972   : > { %3930 = vpow2.f32 %v1785_v24  ;;  %v1799_v42 = vand.u32 %v1794_v40, %v4444_v27 }
 0x974   : > { %v3929_v25 = vpop.eup %3928 }
 0x975   : > { %v1677_v26 = vsel %vm1434_vm8, %v3929_v25, 0.0 }
 0x976   : > { %1678 = vadd.xlane.f32.xlu0 %v1677_v26 }
 0x97c   : > { %v3931_v28 = vpop.eup %3930 }
 0x97d   : > { %v1787_v29 = vsel %vm1434_vm8, %v3931_v28, 0.0 }
 0x97e   : > { %1788 = vadd.xlane.f32.xlu0 %v1787_v29 }
 0x994   : > { %1683 = vrot.lane.b32.xlu0 %v4463_v52, %s4913_s1  ;;  %s4915_s1 = smov 16  }
 0xa03   : > { %v1679_v30 = vpop.xlane.xlu0 %1678 }
 0xa04   : > { %3932 = vrcp.f32 %v1679_v30 }
 0xa0b   : > { %v1789_v32 = vpop.xlane.xlu0 %1788 }
 0xa0c   : > { %3934 = vrcp.f32 %v1789_v32  ;;  %v3358_v32 = vld [vmem:[%s4887_s12] ss:$0 sm:$0xff] }
 0xa0e   : > { %v3933_v33 = vpop.eup %3932 }
 0xa0f   : > { %v1681_v35 = vmul.f32 %v3933_v33, %v3929_v25  ;;  %v1684_v36 = vpop.permute.xlu0 %1683 }
 0xa10   : > { %v1689_v37 = vand.u32 %v1684_v36, %v4444_v27 }
 0xa11   : > { %v1682_v41 = vpack.c.bf16 %v1681_v35, %v1681_v35 }
 0xa12   : > { %3640 = vmatpush3.bf16.msra.mxu0 %v1689_v37  ;;  %v3359_v37 = vld [vmem:[%s4888_s13] ss:$0 sm:$0xff] }
 0xa13   : > { %3651 = vmatprep.subr.bf16.mxu0 %v4043_v38 }
 0xa15   : > { %3642 = vmatmul.mubr.msk.bf16.vlgmr.msra.gmra.mrb[8].mxu0 %vm1449_vm10, %v1682_v41 }
 0xa16   : > { %v3935_v43 = vpop.eup %3934  ;;  %3652 = vmatpush3.bf16.msra.mxu0 %v1799_v42  ;;  %3653 = vmatprep.mubr.msk.bf16.mxu0 %vm4044_vm1, %v4043_v38 }
 0xa17   : > { %v1791_v44 = vmul.f32 %v3935_v43, %v3931_v28  ;;  %3665 = vmatprep.subr.bf16.mxu0 %v4043_v38 }
 0xa19   : > { %v1792_v45 = vpack.c.bf16 %v1791_v44, %v1791_v44  ;;  %v3892_v44 = vld [vmem:[%s4891_s16] sm:$0xff]  }
 0xa1d   : > { %3654 = vmatmul.mubr.msk.bf16.vlgmr.msra.gmra.mrb[12].mxu0 %vm1449_vm10, %v1792_v45  ;;  %v3893_v45 = vld [vmem:[%s4891_s16 + $0x8] sm:$0xff]  }
 0xa1e   : > { %3669 = vmatprep.mubr.msk.bf16.mxu0 %vm4044_vm1, %v4043_v38  ;;  %3666 = vmatpush3.bf16.msra.mxu0 %v3890_v20 }
 0xa1f   : > { %3667 = vmatprep.subr.bf16.mxu0 %v4043_v38 }
 0xa22   : > { %3668 = vmatpush3.bf16.msra.mxu0 %v3891_v21 }
 0xa23   : > { %3693 = vmatprep.subr.bf16.mxu0 %v4043_v38 }
 0xae8   : > { %v1725_v47 = vpop.f32.mrb[8].mxu0 }
 0xae9   : > { %v3643_v49 = vpop.f32.mrb[9].mxu0 }
 0xaea   : > { %v1728_v50 = vpop.f32.mrb[10].mxu0  ;;  %v3897_v49 = vld [vmem:[%s4891_s16 + $0x28] sm:$0xff]  }
 0xaeb   : > { %v3644_v51 = vpop.f32.mrb[11].mxu0  ;;  %v3898_v50 = vld [vmem:[%s4891_s16 + $0x30] sm:$0xff]  }
 0xaec   : > { %v3899_v51 = vld [vmem:[%s4891_s16 + $0x38] sm:$0xff]  }
 0xaf0   : > { %v1835_v52 = vpop.f32.mrb[12].mxu0 }
 0xaf1   : > { %1842 = vrot.lane.b32.xlu1 %v1835_v52, %s4915_s1  ;;  %v3655_v53 = vpop.f32.mrb[13].mxu0  ;;  %v3360_v52 = vld [vmem:[%s4890_s15] ss:$0 sm:$0xff] }
 0xaf2   : > { %v1838_v54 = vpop.f32.mrb[14].mxu0 }
 0xaf3   : > { %v3656_v55 = vpop.f32.mrb[15].mxu0 }
 0xaf5   : > { %1610 = vrot.lane.b32.xlu1 %v4488_v5, %s4915_s1  ;;  %s4958_s1 = sld [smem:[#allocation21_spill]] }
 0xafb   : > { %s4833_s0 = scalar_lea.hbm %s4958_s1, %s3454_s28 }
 0xb63   : > { %v1843_v56 = vpop.permute.xlu1 %1842 }
 0xb64   : > { %v1845_v57 = vsel %vm1387_vm7, %v1725_v47, %v1843_v56  ;;  %v3895_v47 = vld [vmem:[%s4891_s16 + $0x18] sm:$0xff]  }
 0xb65   : > { %v1847_v58 = vrot.slane %v1845_v57, 3 }
 0xb67   : > { %v1611_v59 = vpop.permute.xlu1 %1610 }
 0xb68   : > { %v1613_v60 = vsel %vm1387_vm7, %v4456_v39, %v1611_v59 }
 0xb69   : > { %v1849_v61 = vsel %vm1264_vm3, %v1613_v60, %v1847_v58 }
 0xb6a   : > { %v1850_v62 = vpack.c.bf16 %v1847_v58, %v1849_v61 }
 0xb6c   : > { %3662 = vmatmul.mubr.msk.bf16.vlgmr.msra.gmra.mrb[32].mxu1 %vm1270_vm5, %v1850_v62 }
 0xb6d   : > { %3689 = vmatprep.mubr.msk.bf16.mxu1 %vm4044_vm1, %v4043_v38  ;;  %3674 = vmatpush3.bf16.msra.mxu1 %v3892_v44 }
 0xb6e   : > { %3675 = vmatprep.subr.bf16.mxu1 %v4043_v38 }
 0xb71   : > { %3676 = vmatpush3.bf16.msra.mxu1 %v3893_v45 }
 0xb72   : > { %3677 = vmatprep.subr.bf16.mxu1 %v4043_v38 }
 0xb75   : > { %3678 = vmatpush3.bf16.msra.mxu1 %v3894_v46 }
 0xb76   : > { %3679 = vmatprep.subr.bf16.mxu1 %v4043_v38 }
 0xb79   : > { %3680 = vmatpush3.bf16.msra.mxu1 %v3895_v47 }
 0xb7a   : > { %3681 = vmatprep.subr.bf16.mxu1 %v4043_v38 }
 0xb7d   : > { %3682 = vmatpush3.bf16.msra.mxu1 %v3896_v48 }
 0xb7e   : > { %3683 = vmatprep.subr.bf16.mxu1 %v4043_v38 }
 0xb81   : > { %3684 = vmatpush3.bf16.msra.mxu1 %v3897_v49  ;;  %v3376_v49 = vld [vmem:[%s4949_s29 + $0x1] ss:$0 sm:$0xff] }
 0xb82   : > { %3685 = vmatprep.subr.bf16.mxu1 %v4043_v38 }
 0xb85   : > { %3686 = vmatpush3.bf16.msra.mxu1 %v3898_v50 }
 0xb86   : > { %3687 = vmatprep.subr.bf16.mxu1 %v4043_v38 }
 0xb89   : > { %3688 = vmatpush3.bf16.msra.mxu1 %v3899_v51 }
 0xb8a   : > { %3719 = vmatprep.subr.bf16.mxu1 %v4043_v38 }
 0xc3f   : > { %v1911_v0 = vpop.f32.mrb[32].mxu1 }
 0xc40   : > { %v1912_v2 = vadd.f32 %v3353_v63, %v1911_v0  ;;  %v3663_v3 = vpop.f32.mrb[33].mxu1 }
 0xc41   : > { %v1914_v39 = vpop.f32.mrb[34].mxu1 }
 0xc42   : > { %v1925_v4 = vmul.f32 %v3357_v1, %v1912_v2  ;;  %v1915_v5 = vadd.f32 %v3353_v63, %v1914_v39  ;;  %v3664_v6 = vpop.f32.mrb[35].mxu1 }
 0xc44   : > { %v4533_v7 = vadd.f32 %v1925_v4, %v4393_v34  ;;  %v1926_v8 = vmul.f32 %v3357_v1, %v1915_v5 }
 0xc46   : > { %v4536_v9 = vadd.f32 %v1926_v8, %v4388_v31  ;;  %v1931_v10 = vsel %vm1270_vm5, %v4533_v7, 0.0 }
 0xc47   : > { %1932 = vadd.xlane.f32.xlu0 %v1931_v10 }
 0xc48   : > { %v1934_v11 = vsel %vm1274_vm6, %v4536_v9, 0.0 }
 0xc49   : > { %1935 = vadd.xlane.f32.xlu1 %v1934_v11 }
 0xcd4   : > { %v1933_v12 = vpop.xlane.xlu0 %1932 }
 0xcd5   : > { %v1937_v13 = vmul.f32 0.03125, %v1933_v12 }
 0xcd6   : > { %v1936_v14 = vpop.xlane.xlu1 %1935 }
 0xcd7   : > { %v1939_v15 = vsub.f32 %v4533_v7, %v1937_v13  ;;  %v1938_v16 = vmul.f32 0.03125, %v1936_v14 }
 0xcd9   : > { %v1940_v34 = vsub.f32 %v4536_v9, %v1938_v16  ;;  %v1941_v17 = vmul.f32 %v1939_v15, %v1939_v15 }
 0xcdb   : > { %v1943_v31 = vsel %vm1270_vm5, %v1941_v17, 0.0  ;;  %v1942_v18 = vmul.f32 %v1940_v34, %v1940_v34 }
 0xcdc   : > { %1944 = vadd.xlane.f32.xlu0 %v1943_v31 }
 0xcdd   : > { %v1946_v19 = vsel %vm1274_vm6, %v1942_v18, 0.0 }
 0xce0   : > { %1947 = vadd.xlane.f32.xlu0 %v1946_v19 }
 0xd69   : > { %v1945_v22 = vpop.xlane.xlu0 %1944 }
 0xd6a   : > { %v1949_v23 = vmul.f32 0.03125, %v1945_v22 }
 0xd6c   : > { %v1951_v24 = vadd.f32 1e-06, %v1949_v23 }
 0xd6d   : > { %v1948_v25 = vpop.xlane.xlu0 %1947 }
 0xd6e   : > { %3936 = vrsqrt.f32 %v1951_v24  ;;  %v1950_v26 = vmul.f32 0.03125, %v1948_v25 }
 0xd70   : > { %v1952_v28 = vadd.f32 1e-06, %v1950_v26 }
 0xd72   : > { %3938 = vrsqrt.f32 %v1952_v28 }
 0xd78   : > { %v3937_v29 = vpop.eup %3936 }
 0xd79   : > { %v1955_v30 = vmul.f32 %v3937_v29, %v1939_v15  ;;  %v3364_v15 = vld [vmem:[%s4892_s17] ss:$0 sm:$0xff] }
 0xd7b   : > { %v1963_v35 = vmul.f32 %v3358_v32, %v1955_v30 }
 0xd7c   : > { %v3939_v33 = vpop.eup %3938 }
 0xd7d   : > { %v1956_v36 = vmul.f32 %v3939_v33, %v1940_v34  ;;  %v1971_v41 = vadd.f32 %v3359_v37, %v1963_v35  ;;  %v3373_v34 = vld [vmem:[%s4893_s18] ss:$0 sm:$0xff] }
 0xd7f   : > { %v1964_v40 = vmul.f32 %v3358_v32, %v1956_v36 }
 0xd81   : > { %v1972_v42 = vadd.f32 %v3359_v37, %v1964_v40  ;;  %v3900_v40 = vld [vmem:[%s4948_s26 + $0x10] sm:$0xff]  }
 0xd83   : > { %v1973_v43 = vpack.c.bf16 %v1972_v42, %v1971_v41  ;;  %v3901_v41 = vld [vmem:[%s4948_s26 + $0x18] sm:$0xff]  }
 0xd85   : > { %3670 = vmatmul.mubr.msk.bf16.vlgmr.msra.gmra.mrb[16].mxu0 %vm1270_vm5, %v1973_v43 }
 0xd86   : > { %3697 = vmatprep.mubr.msk.bf16.mxu0 %vm4044_vm1, %v4043_v38  ;;  %3694 = vmatpush3.bf16.msra.mxu0 %v3900_v40 }
 0xd87   : > { %3695 = vmatprep.subr.bf16.mxu0 %v4043_v38 }
 0xd8a   : > { %3696 = vmatpush3.bf16.msra.mxu0 %v3901_v41 }
 0xd8b   : > { %3701 = vmatprep.subr.bf16.mxu0 %v4043_v38 }
 0xe58   : > { %v2034_v53 = vpop.f32.mrb[16].mxu0 }
 0xe59   : > { %v2035_v54 = vadd.f32 %v3360_v52, %v2034_v53  ;;  %v3671_v55 = vpop.f32.mrb[17].mxu0 }
 0xe5a   : > { %v2037_v56 = vpop.f32.mrb[18].mxu0 }
 0xe5b   : > { %v2041_v57 = vmul.f32 %v2035_v54, %v2035_v54  ;;  %v2038_v58 = vadd.f32 %v3360_v52, %v2037_v56  ;;  %v3672_v59 = vpop.f32.mrb[19].mxu0 }
 0xe5c   : > { %v3383_v59 = vld [vmem:[%s4951_s8 + $0x1] ss:$0 sm:$0xff] }
 0xe5d   : > { %v2043_v60 = vmul.f32 %v2041_v57, %v2035_v54  ;;  %v2042_v61 = vmul.f32 %v2038_v58, %v2038_v58 }
 0xe5f   : > { %v2045_v62 = vmul.f32 0.044715, %v2043_v60  ;;  %v2044_v63 = vmul.f32 %v2042_v61, %v2038_v58 }
 0xe61   : > { %v2047_v0 = vadd.f32 %v2045_v62, %v2035_v54  ;;  %v2046_v1 = vmul.f32 0.044715, %v2044_v63 }
 0xe63   : > { %v2049_v2 = vmul.f32 0.7978846, %v2047_v0  ;;  %v2048_v3 = vadd.f32 %v2046_v1, %v2038_v58 }
 0xe65   : > { %3940 = vtanh.f32 %v2049_v2  ;;  %v2050_v39 = vmul.f32 0.7978846, %v2048_v3 }
 0xe67   : > { %3942 = vtanh.f32 %v2050_v39 }
 0xe6f   : > { %v3941_v4 = vpop.eup %3940 }
 0xe70   : > { %v2053_v5 = vadd.f32 1.0, %v3941_v4 }
 0xe71   : > { %v3943_v6 = vpop.eup %3942 }
 0xe72   : > { %v2055_v8 = vmul.f32 0.5, %v2053_v5  ;;  %v2054_v10 = vadd.f32 1.0, %v3943_v6 }
 0xe74   : > { %v2056_v11 = vmul.f32 0.5, %v2054_v10  ;;  %v2057_v12 = vmul.f32 %v2055_v8, %v2035_v54  ;;  %v3377_v54 = vld [vmem:[%s4950_s6 + $0x1] ss:$0 sm:$0xff]  ;;  %s3216_s6 = scalar_lea.sflag [#allocation3], %s704_s2 }
 0xe76   : > { %v2058_v13 = vmul.f32 %v2056_v11, %v2038_v58 }
 0xe78   : > { %v2059_v14 = vpack.c.bf16 %v2058_v13, %v2057_v12 }
 0xe7a   : > { %3690 = vmatmul.mubr.bf16.vlgmr.msra.gmra.mrb[36].mxu1 %v2059_v14 }
 0xe7b   : > { %3721 = vmatprep.mubr.msk.bf16.mxu1 %vm4044_vm1, %v4043_v38 }
 0xf4d   : > { %v2165_v16 = vpop.f32.mrb[36].mxu1 }
 0xf4e   : > { %v2166_v17 = vadd.f32 %v3364_v15, %v2165_v16  ;;  %v3691_v31 = vpop.f32.mrb[37].mxu1 }
 0xf4f   : > { %v2168_v18 = vpop.f32.mrb[38].mxu1 }
 0xf50   : > { %v2179_v19 = vmul.f32 %v3373_v34, %v2166_v17  ;;  %v2169_v20 = vadd.f32 %v3364_v15, %v2168_v18  ;;  %v3692_v21 = vpop.f32.mrb[39].mxu1 }
 0xf52   : > { %v4607_v22 = vadd.f32 %v2179_v19, %v4533_v7  ;;  %v2180_v23 = vmul.f32 %v3373_v34, %v2169_v20 }
 0xf54   : > { %v4610_v24 = vadd.f32 %v2180_v23, %v4536_v9  ;;  %v2187_v25 = vsel %vm1270_vm5, %v4607_v22, 0.0 }
 0xf55   : > { %2188 = vadd.xlane.f32.xlu0 %v2187_v25 }
 0xf56   : > { %v2190_v26 = vsel %vm1274_vm6, %v4610_v24, 0.0 }
 0xf57   : > { %2191 = vadd.xlane.f32.xlu1 %v2190_v26 }
 0xfe2   : > { %v2189_v28 = vpop.xlane.xlu0 %2188 }
 0xfe3   : > { %v2193_v29 = vmul.f32 0.03125, %v2189_v28 }
 0xfe4   : > { %v2192_v30 = vpop.xlane.xlu1 %2191 }
 0xfe5   : > { %v2195_v32 = vsub.f32 %v4607_v22, %v2193_v29  ;;  %v2194_v33 = vmul.f32 0.03125, %v2192_v30 }
 0xfe7   : > { %v2196_v7 = vsub.f32 %v4610_v24, %v2194_v33  ;;  %v2197_v35 = vmul.f32 %v2195_v32, %v2195_v32 }
 0xfe9   : > { %v2199_v9 = vsel %vm1270_vm5, %v2197_v35, 0.0  ;;  %v2198_v36 = vmul.f32 %v2196_v7, %v2196_v7 }
 0xfea   : > { %2200 = vadd.xlane.f32.xlu0 %v2199_v9 }
 0xfeb   : > { %v2202_v37 = vsel %vm1274_vm6, %v2198_v36, 0.0 }
 0xfec   : > { %2203 = vadd.xlane.f32.xlu1 %v2202_v37 }
0x1077   : > { %v2201_v42 = vpop.xlane.xlu0 %2200 }
0x1078   : > { %v2205_v43 = vmul.f32 0.03125, %v2201_v42 }
0x1079   : > { %v2204_v44 = vpop.xlane.xlu1 %2203 }
0x107a   : > { %v2207_v45 = vadd.f32 1e-06, %v2205_v43  ;;  %v2206_v46 = vmul.f32 0.03125, %v2204_v44 }
0x107c   : > { %3944 = vrsqrt.f32 %v2207_v45  ;;  %v2208_v47 = vadd.f32 1e-06, %v2206_v46 }
0x107e   : > { %3946 = vrsqrt.f32 %v2208_v47 }
0x1086   : > { %v3945_v48 = vpop.eup %3944 }
0x1087   : > { %v2211_v50 = vmul.f32 %v3945_v48, %v2195_v32 }
0x1088   : > { %v3947_v51 = vpop.eup %3946 }
0x1089   : > { %v2219_v52 = vmul.f32 %v3376_v49, %v2211_v50  ;;  %v2212_v53 = vmul.f32 %v3947_v51, %v2196_v7 }
0x108b   : > { %v2220_v55 = vmul.f32 %v3376_v49, %v2212_v53  ;;  %v2227_v56 = vadd.f32 %v3377_v54, %v2219_v52 }
0x108d   : > { %v2228_v57 = vadd.f32 %v3377_v54, %v2220_v55 }
0x108f   : > { %v2229_v58 = vpack.c.bf16 %v2228_v57, %v2227_v56 }
0x1091   : > { %3698 = vmatmul.mubr.msk.bf16.vlgmr.msra.gmra.mrb[20].mxu0 %vm1270_vm5, %v2229_v58 }
0x1092   : > { %3703 = vmatprep.mubr.msk.bf16.mxu0 %vm4044_vm1, %v4043_v38 }
0x1164   : > { %v2292_v60 = vpop.f32.mrb[20].mxu0 }
0x1165   : > { %v2293_v61 = vadd.f32 %v3383_v59, %v2292_v60  ;;  %v3699_v62 = vpop.f32.mrb[21].mxu0 }
0x1166   : > { %v2295_v63 = vpop.f32.mrb[22].mxu0 }
0x1167   : > { %v4640_v0 = vpack.c.bf16 %v2293_v61, %v2293_v61  ;;  %v2296_v1 = vadd.f32 %v3383_v59, %v2295_v63  ;;  %v3700_v2 = vpop.f32.mrb[23].mxu0 }
0x1169   : > { %v2524_v3 = vpack.c.bf16 %v2296_v1, %v2293_v61  ;;  %2301 = vrot.lane.b32.xlu0 %v4640_v0, %s4045_s25 }
0x116b   : > { %v2526_v39 = vshrl.u32 %v2524_v3, 16  ;;  %v2529_v4 = vshll.u32 %v2524_v3, 16 }
0x116d   : > { %v2528_v5 = vrot.slane %v2526_v39, 2  ;;  %v2531_v6 = vrot.slane %v2529_v4, 3  ;;  %2411 = vrot.lane.b32.xlu0 %v4640_v0, %s4953_s27 }
0x116f   : > { %v4646_v8 = vor.u32 %v2531_v6, %v2528_v5 }
0x1171   : > { %2533 = vrot.lane.b32.xlu0 %v4646_v8, %s4045_s25  ;;  %s4955_s25 = smov 64  }
0x1175   : > { %2641 = vrot.lane.b32.xlu0 %v4646_v8, %s4954_s24 }
0x11db   : > { %v2302_v10 = vpop.permute.xlu0 %2301 }
0x11dc   : > { %v2307_v11 = vsel %vm1387_vm7, %v2302_v10, 0 }
0x11dd   : > { %3702 = vmatpush3.bf16.xpose.msra.mxu0 %v2307_v11 }
0x11de   : > { %3707 = vmatprep.subr.bf16.mxu0 %v4043_v38 }
0x11df   : > { %v2412_v28 = vpop.permute.xlu0 %2411 }
0x11e0   : > { %v2417_v30 = vsel %vm1387_vm7, %v2412_v28, 0 }
0x11e3   : > { %v2534_v32 = vpop.permute.xlu0 %2533 }
0x11e4   : > { %3704 = vmatmul.mubr.msk.bf16.vlgmr.msra.gmra.mrb[24].mxu0 %vm1387_vm7, %v4640_v0  ;;  %v2539_v7 = vsel %vm1387_vm7, %v2534_v32, 0 }
0x11e5   : > { %3709 = vmatprep.mubr.msk.bf16.mxu0 %vm4044_vm1, %v4043_v38 }
0x11e7   : > { %v2642_v36 = vpop.permute.xlu0 %2641 }
0x12b7   : > { %v2343_v12 = vpop.f32.mrb[24].mxu0 }
0x12b8   : > { %v3705_v13 = vpop.f32.mrb[25].mxu0  ;;  %v2349_v14 = vsel %vm1434_vm8, %v2343_v12, -inf }
0x12b9   : > { %2350 = vmax.xlane.f32.xlu1 %v2349_v14  ;;  %v2346_v15 = vpop.f32.mrb[26].mxu0 }
0x12ba   : > { %v3706_v16 = vpop.f32.mrb[27].mxu0 }
0x1346   : > { %v2351_v34 = vpop.xlane.xlu1 %2350 }
0x1347   : > { %v2352_v17 = vsub.f32 %v2343_v12, %v2351_v34 }
0x1349   : > { %v2353_v31 = vmul.f32 1.442695, %v2352_v17 }
0x134b   : > { %3948 = vpow2.f32 %v2353_v31 }
0x1355   : > { %v3949_v18 = vpop.eup %3948 }
0x1356   : > { %v2355_v19 = vsel %vm1434_vm8, %v3949_v18, 0.0 }
0x1357   : > { %2356 = vadd.xlane.f32.xlu1 %v2355_v19 }
0x1368   : > { %2361 = vrot.lane.b32.xlu1 %v4640_v0, %s4955_s25 }
0x136c   : > { %2409 = vrot.lane.b32.xlu1 %v4640_v0, %s4954_s24 }
0x1370   : > { %2643 = vrot.lane.b32.xlu1 %v4646_v8, %s4953_s27  ;;  %s4957_s27 = smov 16  }
0x13e4   : > { %v2357_v20 = vpop.xlane.xlu1 %2356 }
0x13e5   : > { %3950 = vrcp.f32 %v2357_v20 }
0x13e8   : > { %v2362_v21 = vpop.permute.xlu1 %2361 }
0x13e9   : > { %v2367_v23 = vand.u32 %v2362_v21, %v4444_v27 }
0x13eb   : > { %3708 = vmatpush3.bf16.msra.mxu0 %v2367_v23 }
0x13ec   : > { %3713 = vmatprep.subr.bf16.mxu0 %v4043_v38  ;;  %v2410_v33 = vpop.permute.xlu1 %2409 }
0x13ef   : > { %v3951_v25 = vpop.eup %3950 }
0x13f0   : > { %v2359_v26 = vmul.f32 %v3951_v25, %v3949_v18  ;;  %v2644_v35 = vpop.permute.xlu1 %2643 }
0x13f1   : > { %v2649_v9 = vsel %vm1387_vm7, %v2644_v35, 0  ;;  %v3903_v35 = vld [vmem:[%s4952_s9 + $0x18] sm:$0xff]  }
0x13f2   : > { %v2360_v29 = vpack.c.bf16 %v2359_v26, %v2359_v26 }
0x13f4   : > { %3710 = vmatmul.mubr.msk.bf16.vlgmr.msra.gmra.mrb[28].mxu0 %vm1449_vm10, %v2360_v29 }
0x13f5   : > { %3714 = vmatpush3.bf16.xpose.msra.mxu0 %v2417_v30  ;;  %3715 = vmatprep.mubr.msk.bf16.mxu0 %vm4044_vm1, %v4043_v38 }
0x13f6   : > { %3725 = vmatprep.subr.bf16.mxu0 %v4043_v38 }
0x13fc   : > { %3716 = vmatmul.mubr.msk.bf16.vlgmr.msra.gmra.mrb[32].mxu0 %vm1387_vm7, %v2410_v33  ;;  %v3902_v33 = vld [vmem:[%s4952_s9 + $0x10] sm:$0xff]  }
0x13fd   : > { %3726 = vmatpush3.bf16.xpose.msra.mxu0 %v2539_v7  ;;  %3727 = vmatprep.mubr.msk.bf16.mxu0 %vm4044_vm1, %v4043_v38 }
0x13fe   : > { %3737 = vmatprep.subr.bf16.mxu0 %v4043_v38 }
0x1404   : > { %3728 = vmatmul.mubr.msk.bf16.vlgmr.msra.gmra.mrb[36].mxu0 %vm1387_vm7, %v4646_v8 }
0x1405   : > { %3738 = vmatpush3.bf16.xpose.msra.mxu0 %v2649_v9  ;;  %3739 = vmatprep.mubr.msk.bf16.mxu0 %vm4044_vm1, %v4043_v38 }
0x1406   : > { %3749 = vmatprep.subr.bf16.mxu0 %v4043_v38 }
0x140c   : > { %3740 = vmatmul.mubr.msk.bf16.vlgmr.msra.gmra.mrb[40].mxu0 %vm1387_vm7, %v2642_v36 }
0x140d   : > { %3753 = vmatprep.mubr.msk.bf16.mxu0 %vm4044_vm1, %v4043_v38  ;;  %3750 = vmatpush3.bf16.msra.mxu0 %v3902_v33  ;;  %v3909_v33 = vld [vmem:[%s4891_s16 + $0x58] sm:$0xff]  }
0x140e   : > { %3751 = vmatprep.subr.bf16.mxu0 %v4043_v38 }
0x1411   : > { %3752 = vmatpush3.bf16.msra.mxu0 %v3903_v35  ;;  %v3911_v35 = vld [vmem:[%s4891_s16 + $0x68] sm:$0xff]  }
0x1412   : > { %3765 = vmatprep.subr.bf16.mxu0 %v4043_v38 }
0x14c7   : > { %v4687_v37 = vpop.f32.mrb[28].mxu0 }
0x14c8   : > { %v3711_v40 = vpop.f32.mrb[29].mxu0 }
0x14c9   : > { %v2406_v41 = vpop.f32.mrb[30].mxu0 }
0x14ca   : > { %v3712_v42 = vpop.f32.mrb[31].mxu0 }
0x14cf   : > { %v2453_v43 = vpop.f32.mrb[32].mxu0 }
0x14d0   : > { %v3717_v44 = vpop.f32.mrb[33].mxu0  ;;  %v2459_v45 = vsel %vm1434_vm8, %v2453_v43, -inf }
0x14d1   : > { %2460 = vmax.xlane.f32.xlu1 %v2459_v45  ;;  %v2456_v46 = vpop.f32.mrb[34].mxu0 }
0x14d2   : > { %v3718_v47 = vpop.f32.mrb[35].mxu0 }
0x14d7   : > { %v2575_v48 = vpop.f32.mrb[36].mxu0 }
0x14d8   : > { %v3729_v49 = vpop.f32.mrb[37].mxu0  ;;  %v2581_v50 = vsel %vm1434_vm8, %v2575_v48, -inf }
0x14d9   : > { %2582 = vmax.xlane.f32.xlu0 %v2581_v50  ;;  %v2578_v51 = vpop.f32.mrb[38].mxu0 }
0x14da   : > { %v3730_v52 = vpop.f32.mrb[39].mxu0 }
0x14db   : > { %v3400_v52 = vld [vmem:[%s4885_s10 + $0x1] ss:$0 sm:$0xff] }
0x14df   : > { %v2685_v53 = vpop.f32.mrb[40].mxu0 }
0x14e0   : > { %v3741_v54 = vpop.f32.mrb[41].mxu0  ;;  %v2691_v55 = vsel %vm1434_vm8, %v2685_v53, -inf }
0x14e1   : > { %2692 = vmax.xlane.f32.xlu0 %v2691_v55  ;;  %v2688_v56 = vpop.f32.mrb[42].mxu0  ;;  %v3405_v54 = vld [vmem:[%s4886_s11 + $0x1] ss:$0 sm:$0xff] }
0x14e2   : > { %2471 = vrot.lane.b32.xlu1 %v4640_v0, %s4956_s4  ;;  %v3742_v57 = vpop.f32.mrb[43].mxu0 }
0x155e   : > { %v2461_v58 = vpop.xlane.xlu1 %2460 }
0x155f   : > { %v2462_v59 = vsub.f32 %v2453_v43, %v2461_v58 }
0x1561   : > { %v2463_v60 = vmul.f32 1.442695, %v2462_v59 }
0x1562   : > { %v2472_v61 = vpop.permute.xlu1 %2471 }
0x1563   : > { %3952 = vpow2.f32 %v2463_v60  ;;  %v2477_v62 = vand.u32 %v2472_v61, %v4444_v27 }
0x1565   : > { %3720 = vmatpush3.bf16.msra.mxu1 %v2477_v62 }
0x1566   : > { %v2583_v63 = vpop.xlane.xlu0 %2582  ;;  %3731 = vmatprep.subr.bf16.mxu1 %v4043_v38 }
0x1567   : > { %v2584_v1 = vsub.f32 %v2575_v48, %v2583_v63 }
0x1569   : > { %v2585_v2 = vmul.f32 1.442695, %v2584_v1 }
0x156b   : > { %3954 = vpow2.f32 %v2585_v2 }
0x156d   : > { %v3953_v3 = vpop.eup %3952 }
0x156e   : > { %v2693_v39 = vpop.xlane.xlu0 %2692  ;;  %v2465_v4 = vsel %vm1434_vm8, %v3953_v3, 0.0 }
0x156f   : > { %v2694_v0 = vsub.f32 %v2685_v53, %v2693_v39  ;;  %2466 = vadd.xlane.f32.xlu0 %v2465_v4 }
0x1571   : > { %v2695_v5 = vmul.f32 1.442695, %v2694_v0 }
0x1573   : > { %3956 = vpow2.f32 %v2695_v5 }
0x1575   : > { %v3955_v6 = vpop.eup %3954 }
0x1576   : > { %v2587_v10 = vsel %vm1434_vm8, %v3955_v6, 0.0 }
0x1577   : > { %2588 = vadd.xlane.f32.xlu1 %v2587_v10 }
0x157d   : > { %v3957_v11 = vpop.eup %3956 }
0x157e   : > { %v2697_v12 = vsel %vm1434_vm8, %v3957_v11, 0.0 }
0x157f   : > { %2698 = vadd.xlane.f32.xlu0 %v2697_v12  ;;  %v3905_v12 = vld [vmem:[%s4889_s14 + $0x18] sm:$0xff]  }
0x1588   : > { %2703 = vrot.lane.b32.xlu1 %v4646_v8, %s4956_s4 }
0x1595   : > { %2593 = vrot.lane.b32.xlu0 %v4646_v8, %s4955_s25 }
0x15fc   : > { %v2467_v13 = vpop.xlane.xlu0 %2466 }
0x15fd   : > { %3958 = vrcp.f32 %v2467_v13 }
0x1604   : > { %v2589_v14 = vpop.xlane.xlu1 %2588 }
0x1605   : > { %3960 = vrcp.f32 %v2589_v14 }
0x1607   : > { %v3959_v15 = vpop.eup %3958 }
0x1608   : > { %v2469_v16 = vmul.f32 %v3959_v15, %v3953_v3  ;;  %v2704_v8 = vpop.permute.xlu1 %2703 }
0x1609   : > { %v2709_v23 = vand.u32 %v2704_v8, %v4444_v27 }
0x160a   : > { %v2470_v34 = vpack.c.bf16 %v2469_v16, %v2469_v16 }
0x160c   : > { %3722 = vmatmul.mubr.msk.bf16.vlgmr.msra.gmra.mrb[40].mxu1 %vm1449_vm10, %v2470_v34  ;;  %v2699_v17 = vpop.xlane.xlu0 %2698 }
0x160d   : > { %3962 = vrcp.f32 %v2699_v17  ;;  %3733 = vmatprep.mubr.msk.bf16.mxu1 %vm4044_vm1, %v4043_v38 }
0x160f   : > { %v3961_v31 = vpop.eup %3960 }
0x1610   : > { %v2591_v18 = vmul.f32 %v3961_v31, %v3955_v6  ;;  %v2594_v19 = vpop.permute.xlu0 %2593 }
0x1611   : > { %v2599_v20 = vand.u32 %v2594_v19, %v4444_v27  ;;  %v3408_v19 = vld [vmem:[%s4887_s12 + $0x1] ss:$0 sm:$0xff] }
0x1612   : > { %v2592_v21 = vpack.c.bf16 %v2591_v18, %v2591_v18 }
0x1613   : > { %3732 = vmatpush3.bf16.msra.mxu1 %v2599_v20 }
0x1614   : > { %3743 = vmatprep.subr.bf16.mxu1 %v4043_v38 }
0x1616   : > { %3734 = vmatmul.mubr.msk.bf16.vlgmr.msra.gmra.mrb[44].mxu1 %vm1449_vm10, %v2592_v21 }
0x1617   : > { %v3963_v25 = vpop.eup %3962  ;;  %3744 = vmatpush3.bf16.msra.mxu1 %v2709_v23  ;;  %3745 = vmatprep.mubr.msk.bf16.mxu1 %vm4044_vm1, %v4043_v38  ;;  %v3409_v23 = vld [vmem:[%s4888_s13 + $0x1] ss:$0 sm:$0xff] }
0x1618   : > { %v2701_v26 = vmul.f32 %v3963_v25, %v3957_v11  ;;  %3757 = vmatprep.subr.bf16.mxu1 %v4043_v38 }
0x161a   : > { %v2702_v28 = vpack.c.bf16 %v2701_v26, %v2701_v26 }
0x161e   : > { %3746 = vmatmul.mubr.msk.bf16.vlgmr.msra.gmra.mrb[48].mxu1 %vm1449_vm10, %v2702_v28 }
0x161f   : > { %3761 = vmatprep.mubr.msk.bf16.mxu1 %vm4044_vm1, %v4043_v38 }
0x16df   : > { %v2513_v29 = vpop.f32.mrb[40].mxu1 }
0x16e0   : > { %v3723_v30 = vpop.f32.mrb[41].mxu1 }
0x16e1   : > { %v2516_v32 = vpop.f32.mrb[42].mxu1  ;;  %v3906_v30 = vld [vmem:[%s4891_s16 + $0x40] sm:$0xff]  }
0x16e2   : > { %v3724_v27 = vpop.f32.mrb[43].mxu1  ;;  %v3907_v32 = vld [vmem:[%s4891_s16 + $0x48] sm:$0xff]  }
0x16e3   : > { %v3908_v27 = vld [vmem:[%s4891_s16 + $0x50] sm:$0xff]  }
0x16e9   : > { %v2635_v7 = vpop.f32.mrb[44].mxu1 }
0x16ea   : > { %v3735_v9 = vpop.f32.mrb[45].mxu1 }
0x16eb   : > { %v2638_v36 = vpop.f32.mrb[46].mxu1  ;;  %v3912_v9 = vld [vmem:[%s4891_s16 + $0x70] sm:$0xff]  }
0x16ec   : > { %v3736_v40 = vpop.f32.mrb[47].mxu1  ;;  %v3913_v36 = vld [vmem:[%s4891_s16 + $0x78] sm:$0xff]  }
0x16ed   : > { %v3415_v40 = vld [vmem:[%s4890_s15 + $0x1] ss:$0 sm:$0xff] }
0x16f1   : > { %v2745_v41 = vpop.f32.mrb[48].mxu1 }
0x16f2   : > { %2752 = vrot.lane.b32.xlu1 %v2745_v41, %s4957_s27  ;;  %v3747_v42 = vpop.f32.mrb[49].mxu1 }
0x16f3   : > { %v2748_v43 = vpop.f32.mrb[50].mxu1 }
0x16f4   : > { %v3748_v44 = vpop.f32.mrb[51].mxu1 }
0x16f6   : > { %2520 = vrot.lane.b32.xlu1 %v2513_v29, %s4957_s27  ;;  %s706_s27 = scalar_lea.vmem [#allocation2], %s3292_s3  ;;  %s3982_s3 = sshll.u32 %s4052_s5, 4  ;;  %s3983_s3 = int_to_ptr.vmem [resolvable:$false] %s3982_s3 }
0x16f7   : > { %s3229_s24 = sshll.u32 %s706_s27, 4  ;;  %s3984_s9 = scalar_lea.vmem %s3983_s3, 64  ;;  %s4835_s24 = int_to_ptr.vmem [resolvable:$true] %s3229_s24 }
0x16f8   : > { %s3978_s8 = scalar_lea.vmem %s4835_s24, 32  ;;  %p3985_p0 = scmp.lt.s32.totalorder %s4835_s24, %s3983_s3 }
0x16f9   : > { %p3979_p11 = scmp.ne.s32.totalorder %s4835_s24, %s3978_s8  ;;  %p3986_p1 = scmp.lt.s32.totalorder %s3984_s9, %s3978_s8 }
0x16fb   : > { %p3980_p12 = pnand %p3979_p11, %p4211_p5  ;;  %p3987_p2 = por %p3986_p1, %p3985_p0 }
0x16fd   : > { %p3981_p13 = pneg %p3980_p12 }
0x16ff   : > { %p3988_p3 = pnand %p3987_p2, %p3981_p13 }
0x1764   : > { %v2753_v45 = vpop.permute.xlu1 %2752 }
0x1765   : > { %v2755_v46 = vsel %vm1387_vm7, %v2635_v7, %v2753_v45  ;;  %v3910_v7 = vld [vmem:[%s4891_s16 + $0x60] sm:$0xff]  }
0x1766   : > { %v2757_v47 = vrot.slane %v2755_v46, 3 }
0x1768   : > { %v2521_v48 = vpop.permute.xlu1 %2520 }
0x1769   : > { %v2523_v49 = vsel %vm1387_vm7, %v4687_v37, %v2521_v48 }
0x176a   : > { %v2759_v50 = vsel %vm1264_vm3, %v2523_v49, %v2757_v47 }
0x176b   : > { %v2760_v51 = vpack.c.bf16 %v2757_v47, %v2759_v50 }
0x176d   : > { %3754 = vmatmul.mubr.msk.bf16.vlgmr.msra.gmra.mrb[44].mxu0 %vm1270_vm5, %v2760_v51 }
0x176e   : > { %3781 = vmatprep.mubr.msk.bf16.mxu0 %vm4044_vm1, %v4043_v38  ;;  %3766 = vmatpush3.bf16.msra.mxu0 %v3906_v30 }
0x176f   : > { %3767 = vmatprep.subr.bf16.mxu0 %v4043_v38 }
0x1772   : > { %3768 = vmatpush3.bf16.msra.mxu0 %v3907_v32 }
0x1773   : > { %3769 = vmatprep.subr.bf16.mxu0 %v4043_v38 }
0x1776   : > { %3770 = vmatpush3.bf16.msra.mxu0 %v3908_v27 }
0x1777   : > { %3771 = vmatprep.subr.bf16.mxu0 %v4043_v38 }
0x177a   : > { %3772 = vmatpush3.bf16.msra.mxu0 %v3909_v33 }
0x177b   : > { %3773 = vmatprep.subr.bf16.mxu0 %v4043_v38 }
0x177e   : > { %3774 = vmatpush3.bf16.msra.mxu0 %v3910_v7 }
0x177f   : > { %3775 = vmatprep.subr.bf16.mxu0 %v4043_v38 }
0x1782   : > { %3776 = vmatpush3.bf16.msra.mxu0 %v3911_v35 }
0x1783   : > { %3777 = vmatprep.subr.bf16.mxu0 %v4043_v38 }
0x1786   : > { %3778 = vmatpush3.bf16.msra.mxu0 %v3912_v9 }
0x1787   : > { %3779 = vmatprep.subr.bf16.mxu0 %v4043_v38 }
0x178a   : > { %3780 = vmatpush3.bf16.msra.mxu0 %v3913_v36 }
0x1840   : > { %v2823_v53 = vpop.f32.mrb[44].mxu0 }
0x1841   : > { %v2824_v55 = vadd.f32 %v3400_v52, %v2823_v53  ;;  %v3755_v56 = vpop.f32.mrb[45].mxu0 }
0x1842   : > { %v2826_v37 = vpop.f32.mrb[46].mxu0 }
0x1843   : > { %v2838_v57 = vmul.f32 %v3405_v54, %v2824_v55  ;;  %v2827_v58 = vadd.f32 %v3400_v52, %v2826_v37  ;;  %v3756_v59 = vpop.f32.mrb[47].mxu0 }
0x1845   : > { %v4740_v60 = vadd.f32 %v2838_v57, %v4607_v22  ;;  %v2839_v61 = vmul.f32 %v3405_v54, %v2827_v58 }
0x1847   : > { %v2846_v62 = vsel %vm1270_vm5, %v4740_v60, 0.0  ;;  %v2841_v63 = vadd.f32 %v2839_v61, %v4610_v24  ;;  %v3904_v24 = vld [vmem:[%s4889_s14 + $0x10] sm:$0xff]  }
0x1848   : > { %2847 = vadd.xlane.f32.xlu0 %v2846_v62  ;;  %3758 = vmatpush3.bf16.msra.mxu1 %v3904_v24 }
0x1849   : > { %v2849_v1 = vsel %vm1274_vm6, %v2841_v63, 0.0  ;;  %3759 = vmatprep.subr.bf16.mxu1 %v4043_v38 }
0x184a   : > { %2850 = vadd.xlane.f32.xlu1 %v2849_v1 }
0x184c   : > { %3760 = vmatpush3.bf16.msra.mxu1 %v3905_v12 }
0x184d   : > { %3785 = vmatprep.subr.bf16.mxu1 %v4043_v38 }
0x18d5   : > { %v2848_v2 = vpop.xlane.xlu0 %2847 }
0x18d6   : > { %v2852_v3 = vmul.f32 0.03125, %v2848_v2 }
0x18d7   : > { %v2851_v39 = vpop.xlane.xlu1 %2850 }
0x18d8   : > { %v2854_v4 = vsub.f32 %v4740_v60, %v2852_v3  ;;  %v2853_v0 = vmul.f32 0.03125, %v2851_v39  ;;  %v3436_v3 = vld [vmem:[%s4892_s17 + $0x1] ss:$0 sm:$0xff] }
0x18da   : > { %v2855_v5 = vsub.f32 %v2841_v63, %v2853_v0  ;;  %v2856_v6 = vmul.f32 %v2854_v4, %v2854_v4 }
0x18dc   : > { %v2858_v22 = vsel %vm1270_vm5, %v2856_v6, 0.0  ;;  %v2857_v10 = vmul.f32 %v2855_v5, %v2855_v5 }
0x18dd   : > { %2859 = vadd.xlane.f32.xlu0 %v2858_v22 }
0x18de   : > { %v2861_v11 = vsel %vm1274_vm6, %v2857_v10, 0.0 }
0x18e1   : > { %2862 = vadd.xlane.f32.xlu0 %v2861_v11 }
0x196a   : > { %v2860_v13 = vpop.xlane.xlu0 %2859 }
0x196b   : > { %v2864_v14 = vmul.f32 0.03125, %v2860_v13 }
0x196d   : > { %v2866_v15 = vadd.f32 1e-06, %v2864_v14 }
0x196e   : > { %v2863_v16 = vpop.xlane.xlu0 %2862 }
0x196f   : > { %3964 = vrsqrt.f32 %v2866_v15  ;;  %v2865_v34 = vmul.f32 0.03125, %v2863_v16 }
0x1971   : > { %v2867_v17 = vadd.f32 1e-06, %v2865_v34  ;;  %v3914_v34 = vld [vmem:[%s4896_s21] sm:$0xff]  }
0x1973   : > { %3966 = vrsqrt.f32 %v2867_v17  ;;  %v3915_v17 = vld [vmem:[%s4896_s21 + $0x8] sm:$0xff]  }
0x1979   : > { %v3965_v31 = vpop.eup %3964 }
0x197a   : > { %v2870_v18 = vmul.f32 %v3965_v31, %v2854_v4  ;;  %v3446_v4 = vld [vmem:[%s4893_s18 + $0x1] ss:$0 sm:$0xff] }
0x197c   : > { %v2878_v8 = vmul.f32 %v3408_v19, %v2870_v18 }
0x197d   : > { %v3967_v20 = vpop.eup %3966 }
0x197e   : > { %v2871_v21 = vmul.f32 %v3967_v20, %v2855_v5  ;;  %v2886_v26 = vadd.f32 %v3409_v23, %v2878_v8  ;;  %v3447_v20 = vld [vmem:[%s4894_s19] ss:$0 sm:$0xff] }
0x1980   : > { %v2879_v25 = vmul.f32 %v3408_v19, %v2871_v21  ;;  %v3448_v21 = vld [vmem:[%s4895_s20] ss:$0 sm:$0xff] }
0x1982   : > { %v2887_v28 = vadd.f32 %v3409_v23, %v2879_v25 }
0x1984   : > { %v2888_v29 = vpack.c.bf16 %v2887_v28, %v2886_v26 }
0x1986   : > { %3762 = vmatmul.mubr.msk.bf16.vlgmr.msra.gmra.mrb[52].mxu1 %vm1270_vm5, %v2888_v29  ;;  %v3449_v29 = vld [vmem:[%s4897_s22] ss:$0 sm:$0xff] }
0x1987   : > { %3789 = vmatprep.mubr.msk.bf16.mxu1 %vm4044_vm1, %v4043_v38  ;;  %3786 = vmatpush3.bf16.msra.mxu1 %v3914_v34 }
0x1988   : > { %3787 = vmatprep.subr.bf16.mxu1 %v4043_v38 }
0x198b   : > { %3788 = vmatpush3.bf16.msra.mxu1 %v3915_v17 }
0x1a59   : > { %v2951_v41 = vpop.f32.mrb[52].mxu1 }
0x1a5a   : > { %v2952_v42 = vadd.f32 %v3415_v40, %v2951_v41  ;;  %v3763_v43 = vpop.f32.mrb[53].mxu1 }
0x1a5b   : > { %v2954_v44 = vpop.f32.mrb[54].mxu1 }
0x1a5c   : > { %v2958_v45 = vmul.f32 %v2952_v42, %v2952_v42  ;;  %v2955_v46 = vadd.f32 %v3415_v40, %v2954_v44  ;;  %v3764_v47 = vpop.f32.mrb[55].mxu1 }
0x1a5e   : > { %v2960_v48 = vmul.f32 %v2958_v45, %v2952_v42  ;;  %v2959_v49 = vmul.f32 %v2955_v46, %v2955_v46 }
0x1a60   : > { %v2962_v50 = vmul.f32 0.044715, %v2960_v48  ;;  %v2961_v51 = vmul.f32 %v2959_v49, %v2955_v46 }
0x1a62   : > { %v2964_v52 = vadd.f32 %v2962_v50, %v2952_v42  ;;  %v2963_v53 = vmul.f32 0.044715, %v2961_v51 }
0x1a64   : > { %v2966_v54 = vmul.f32 0.7978846, %v2964_v52  ;;  %v2965_v55 = vadd.f32 %v2963_v53, %v2955_v46 }
0x1a66   : > { %3968 = vtanh.f32 %v2966_v54  ;;  %v2967_v56 = vmul.f32 0.7978846, %v2965_v55 }
0x1a68   : > { %3970 = vtanh.f32 %v2967_v56 }
0x1a70   : > { %v3969_v37 = vpop.eup %3968 }
0x1a71   : > { %v2970_v57 = vadd.f32 1.0, %v3969_v37 }
0x1a72   : > { %v3971_v58 = vpop.eup %3970 }
0x1a73   : > { %v2972_v59 = vmul.f32 0.5, %v2970_v57  ;;  %v2971_v61 = vadd.f32 1.0, %v3971_v58 }
0x1a75   : > { %v2973_v62 = vmul.f32 0.5, %v2971_v61  ;;  %v2974_v63 = vmul.f32 %v2972_v59, %v2952_v42 }
0x1a77   : > { %v2975_v1 = vmul.f32 %v2973_v62, %v2955_v46 }
0x1a79   : > { %v2976_v2 = vpack.c.bf16 %v2975_v1, %v2974_v63 }
0x1a7b   : > { %3782 = vmatmul.mubr.bf16.vlgmr.msra.gmra.mrb[48].mxu0 %v2976_v2 }
0x1b4e   : > { %v3084_v39 = vpop.f32.mrb[48].mxu0 }
0x1b4f   : > { %v3085_v0 = vadd.f32 %v3436_v3, %v3084_v39  ;;  %v3783_v5 = vpop.f32.mrb[49].mxu0 }
0x1b50   : > { %v3087_v6 = vpop.f32.mrb[50].mxu0 }
0x1b51   : > { %v3098_v22 = vmul.f32 %v3446_v4, %v3085_v0  ;;  %v3784_v10 = vpop.f32.mrb[51].mxu0 }
0x1b53   : > { %v3099_v11 = vadd.f32 %v3098_v22, %v4740_v60 }
0x1b55   : > { %v3102_v24 = vsel %vm1270_vm5, %v3099_v11, 0.0 }
0x1b56   : > { %3103 = vadd.xlane.f32.xlu0 %v3102_v24 }
0x1be3   : > { %v3104_v12 = vpop.xlane.xlu0 %3103 }
0x1be4   : > { %v3105_v13 = vmul.f32 0.03125, %v3104_v12 }
0x1be6   : > { %v3106_v14 = vsub.f32 %v3099_v11, %v3105_v13 }
0x1be8   : > { %v3107_v15 = vmul.f32 %v3106_v14, %v3106_v14 }
0x1bea   : > { %v3108_v16 = vsel %vm1270_vm5, %v3107_v15, 0.0 }
0x1beb   : > { %3109 = vadd.xlane.f32.xlu1 %v3108_v16 }
0x1c78   : > { %v3110_v60 = vpop.xlane.xlu1 %3109 }
0x1c79   : > { %v3111_v31 = vmul.f32 0.03125, %v3110_v60 }
0x1c7b   : > { %v3112_v18 = vadd.f32 1e-06, %v3111_v31 }
0x1c7d   : > { %3972 = vrsqrt.f32 %v3112_v18 }
0x1c87   : > { %v3973_v19 = vpop.eup %3972 }
0x1c88   : > { %v3114_v8 = vmul.f32 %v3973_v19, %v3106_v14 }
0x1c8a   : > { %v3121_v23 = vmul.f32 %v3447_v20, %v3114_v8 }
0x1c8c   : > { %v3128_v25 = vadd.f32 %v3448_v21, %v3121_v23 }
0x1c8e   : > { %v3130_v26 = vrot.slane %v3128_v25, 4 }
0x1c90   : > { %v3132_v38 = vsel %vm1262_vm2, %v3128_v25, %v3130_v26 }
0x1c91   : > { %v3133_v28 = vpack.c.bf16 %v3132_v38, %v3132_v38 }
0x1c93   : > { %3790 = vmatmul.mubr.msk.bf16.vlgmr.msra.gmra.mrb[56].mxu1 %vm1270_vm5, %v3133_v28 }
0x1d66   : > { %v3194_v30 = vpop.f32.mrb[56].mxu1 }
0x1d67   : > { %v3195_v32 = vadd.f32 %v3449_v29, %v3194_v30  ;;  %v3791_v27 = vpop.f32.mrb[57].mxu1 }
0x1d68   : > { %v3197_v33 = vpop.f32.mrb[58].mxu1 }
0x1d69   : > { %v3792_v7 = vpop.f32.mrb[59].mxu1  ;;  %v3200_v35 = vmul.f32 %v3195_v32, %v3195_v32 }
0x1d6b   : > { %v3201_v9 = vsel %vm773_vm0, %v3200_v35, 0.0 }
0x1d6c   : > { %3202 = vadd.xlane.f32.xlu0 %v3201_v9 }
0x1df9   : > { %v3203_v36 = vpop.xlane.xlu0 %3202 }
0x1dfa   : > { %3974 = vrsqrt.f32 %v3203_v36  ;;  %vm3206_vm11 = vcmp.eq.f32.partialorder %v3203_v36, inf  ;;  %v3209_v42 = vand.u32 2147483648, %v3203_v36  ;;  %vm3208_vm12 = vcmp.eq.f32.partialorder %v3203_v36, 0.0 }
0x1e04   : > { %v3975_v40 = vpop.eup %3974 }
0x1e05   : > { %v3205_v41 = vmul.f32 %v3975_v40, %v3203_v36 }
0x1e07   : > { %v3207_v43 = vsel %vm3206_vm11, %v3203_v36, %v3205_v41 }
0x1e08   : > { %v3210_v44 = vsel %vm3208_vm12, %v3209_v42, %v3207_v43 }
0x1e09   : > { %v3211_v45 = vmax.f32 %v3210_v44, 1e-12 }
0x1e0b   : > { %3976 = vrcp.f32 %v3211_v45 }
0x1e15   : > { %v3977_v46 = vpop.eup %3976 }
0x1e16   : > { %v3213_v47 = vmul.f32 %v3977_v46, %v3195_v32 }
0x1e18   : > { %3214 = vst [vmem:[%s706_s27] sm:$0x3] %v3213_v47 }
0x1e19   : > { %3991 = shalt.err (!%p3988_p3)
}
0x1e1a   : > { %s3992_s2 = scalar_lea.hbm %s4833_s0, 32  ;;  %s3996_s25 = scalar_lea.hbm %s4958_s1, 64 }
0x1e1b   : > { %p3993_p4 = scmp.ne.s32.totalorder %s4833_s0, %s3992_s2  ;;  %p3997_p9 = scmp.lt.u32.totalorder %s4833_s0, %s4958_s1 }
0x1e1c   : > { %p3998_p10 = scmp.lt.u32.totalorder %s3996_s25, %s3992_s2  ;;  %p4000_p12 = scmp.lt.u32.totalorder %s3992_s2, %s4833_s0 }
0x1e1d   : > { %p3994_p7 = pnand %p3993_p4, %p4211_p5 }
0x1e1e   : > { %p3999_p11 = por %p3998_p10, %p3997_p9 }
0x1e1f   : > { %p3995_p8 = pneg %p3994_p7 }
0x1e20   : > { %p4001_p13 = por %p4000_p12, %p3999_p11 }
0x1e22   : > { %p4002_p0 = pnand %p4001_p13, %p3995_p8 }
0x1e24   : > { %4005 = shalt.err (!%p4002_p0)
}
0x1e25   : > { %3794 = dma.vmem_to_hbm [thread:$0]  (%p4211_p5), %s4835_s24, 32, %s4833_s0, %s3216_s6  }
0x1e26 PF: > { %s4959_s8 = sld [smem:[#allocation7_spill]]  ;;  %s4960_s9 = sld [smem:[#allocation5_spill]] }
0x1e2c   : > { %p3800_p1 = scmp.ge.s32.totalorder %s4959_s8, 2  ;;  %s3241_s28 = sand.u32 1, %s4960_s9  }
0x1e2d   : > { %s3242_s27 = scalar_lea.sflag [#allocation3], %s3241_s28 }
0x1e2e   : > { %p3797_p2 = pnand %p3800_p1, %p4215_p6 }
0x1e30   : > { %4023 = dma.done.wait (!%p3797_p2), %s3242_s27, 32  }
0x1e31   : > { %4025 = vsyncadd (!%p3797_p2), %s3242_s27, 4294967264  ;;  %s4962_s25 = sld [smem:[#allocation8_spill]]  ;;  %s4963_s2 = sld [smem:[#allocation6_spill]] }
0x1e32   : > { %s4964_s24 = sld [smem:[#allocation9_spill]]  ;;  %s4965_s4 = smov %s4032_s30 }
0x1e37   : > { %p33_p3 = scmp.ge.s32.totalorder %s4962_s25, 4   ;;  %s4966_s30 = smov %s4963_s2 }
0x1e39   :  { %35 = sbr.rel (!%p33_p3) target bundleno = 15 (0xf), region = 162 }
0x1e40   :  { %3247 = vsyncpa [#allocation3], 1 }
0x1e41   :  { %3249 = vsyncpa [#allocation3 + $0x1], 1 }

</bundles_post_ra>
